<compile_context>
chip_gen: v7x
topology: tpu7x:2x2x1
jax: 0.10.0
libtpu: 0.0.40
codegen_flags: <defaults>
</compile_context>

<pallas_src>
import jax
import jax.numpy as jnp
from jax import lax
from jax.experimental import pallas as pl
from jax.experimental.pallas import tpu as pltpu

# Small config mirroring config.emb_dim / config.hidden_dim
EMB_DIM = 32
HIDDEN_DIM = 32
BATCH = 2
SEQ = 8


def encoder_kernel(xx_ref,      # (T*2B, KPAD)  block-diag augmented inputs
                   w_in_ref,    # (KPAD, 4H)    fused Wih_f / Wih_b / b_f / b_b
                   whh_ref,     # (2H, 4H)      vstack(Whh_f, Whh_b)
                   lens_ref,    # (2B, 1) int32 seq_lens duplicated for both dirs
                   w_red_ref,   # (4H, 2H)      block-diag [Wrh | Wrc]
                   b_red_ref,   # (1, 2H)       [brh | brc]
                   enc_ref,     # out (T, B, 2H)
                   hred_ref,    # out (B, H)
                   cred_ref):   # out (B, H)
    seq, batch, h2 = enc_ref.shape
    hidden = h2 // 2
    b2 = 2 * batch

    # ---- (1) hoisted input projection for all T steps & both directions, one MXU pass
    xg = jnp.dot(xx_ref[...], w_in_ref[...], preferred_element_type=jnp.float32)

    # ---- hoisted loads / constants (kept in vregs across the unrolled loop)
    whh = whh_ref[...]                                        # (2H, 4H)
    lens_v = lens_ref[...]                                    # (2B, 1) int32
    row = lax.broadcasted_iota(jnp.int32, (b2, 1), 0)
    is_fwd = row < batch                                      # rows 0:B fwd, B:2B bwd
    rr = lax.broadcasted_iota(jnp.int32, (b2, 2 * hidden), 0)
    cc = lax.broadcasted_iota(jnp.int32, (b2, 2 * hidden), 1)
    blkmask = ((rr < batch) == (cc < hidden)).astype(jnp.float32)   # block-diag selector

    # state: rows 0:B = forward direction, rows B:2B = backward direction
    h = jnp.zeros((b2, hidden), jnp.float32)
    c = jnp.zeros((b2, hidden), jnp.float32)

    # ---- (2) interleaved, fully unrolled recurrence (T is small & static)
    for s in range(seq):
        tf = s              # forward time index
        tb = seq - 1 - s    # backward time index

        # fused recurrent matmul for both directions: block-diag LHS (2B, 2H)
        # against vstack(Whh_f, Whh_b) -> one MXU push per step
        hdiag = jnp.concatenate([h, h], axis=1) * blkmask            # (2B, 2H)
        gates = xg[s * b2:(s + 1) * b2, :] + jnp.dot(
            hdiag, whh, preferred_element_type=jnp.float32)          # (2B, 4H)

        # (3) i/f/o from a single full-tile sigmoid, tanh only on the g slice
        sig = jax.nn.sigmoid(gates)
        i_g = sig[:, 0 * hidden:1 * hidden]
        f_g = sig[:, 1 * hidden:2 * hidden]
        o_g = sig[:, 3 * hidden:4 * hidden]
        g_g = jnp.tanh(gates[:, 2 * hidden:3 * hidden])

        c_new = f_g * c + i_g * g_g
        h_new = o_g * jnp.tanh(c_new)

        # packed-sequence mask: freeze state & zero output past each row's length
        t_vec = jnp.where(is_fwd, tf, tb)                            # (2B, 1) int32
        valid = t_vec < lens_v                                       # (2B, 1) bool
        h = jnp.where(valid, h_new, h)
        c = jnp.where(valid, c_new, c)
        out = jnp.where(valid, h_new, 0.0)

        # single (T, B, 2H) output: fwd half at time tf, bwd half at time tb
        enc_ref[tf, :, 0:hidden] = out[0:batch, :]
        enc_ref[tb, :, hidden:2 * hidden] = out[batch:b2, :]

    # ---- (4) fused reduce_h / reduce_c: relu([hf|hb|cf|cb] @ W_red + b_red)
    hc = jnp.concatenate([h[0:batch, :], h[batch:b2, :],
                          c[0:batch, :], c[batch:b2, :]], axis=1)    # (B, 4H)
    red = jnp.maximum(
        jnp.dot(hc, w_red_ref[...], preferred_element_type=jnp.float32) + b_red_ref[...],
        0.0)
    hred_ref[...] = red[:, 0:hidden]
    cred_ref[...] = red[:, hidden:2 * hidden]


def encoder_forward(params, x, seq_lens, max_enc_len):
    """x: (B, T, E) f32; seq_lens: (B,) i32 (sorted descending); max_enc_len: static int.
    Returns (enc_out (B, max_enc_len, 2H), (h_red (B, H), c_red (B, H)))."""
    b, t, e = x.shape
    hd = HIDDEN_DIM

    # --- wrapper-side layout plumbing (no compute hoisted out of the kernel) ---
    x_tbe = jnp.transpose(x, (1, 0, 2)).astype(jnp.float32)          # (T, B, E)
    x_rev = jnp.flip(x_tbe, axis=0)                                  # bwd dir, time-reversed

    kdim = 2 * e + 2
    kpad = ((kdim + 127) // 128) * 128                               # lane-align K for the MXU
    one = jnp.ones((t, b, 1), jnp.float32)
    zero_e = jnp.zeros((t, b, e), jnp.float32)
    zero_1 = jnp.zeros((t, b, 1), jnp.float32)
    zero_p = jnp.zeros((t, b, kpad - kdim), jnp.float32)
    top = jnp.concatenate([x_tbe, zero_e, one, zero_1, zero_p], axis=-1)   # fwd rows
    bot = jnp.concatenate([zero_e, x_rev, zero_1, one, zero_p], axis=-1)   # bwd rows
    xx = jnp.concatenate([top, bot], axis=1).reshape(t * 2 * b, kpad)      # (T*2B, KPAD)

    # fused input weight with biases folded into the one-hot columns
    w_in = jnp.zeros((kpad, 4 * hd), jnp.float32)
    w_in = w_in.at[0:e, :].set(params["wih_f"])
    w_in = w_in.at[e:2 * e, :].set(params["wih_b"])
    w_in = w_in.at[2 * e, :].set(params["b_f"][0])
    w_in = w_in.at[2 * e + 1, :].set(params["b_b"][0])

    whh = jnp.concatenate([params["whh_f"], params["whh_b"]], axis=0)      # (2H, 4H)

    # fused reduce weights: [hf|hb|cf|cb] @ w_red = [h_lin | c_lin]
    w_red = jnp.concatenate([
        jnp.concatenate([params["wrh"], jnp.zeros((2 * hd, hd), jnp.float32)], axis=1),
        jnp.concatenate([jnp.zeros((2 * hd, hd), jnp.float32), params["wrc"]], axis=1),
    ], axis=0)                                                             # (4H, 2H)
    b_red = jnp.concatenate([params["brh"], params["brc"]], axis=1)        # (1, 2H)

    lens2 = jnp.concatenate([seq_lens, seq_lens]).astype(jnp.int32).reshape(2 * b, 1)

    vmem = pl.BlockSpec(memory_space=pltpu.MemorySpace.VMEM)
    out_shapes = (
        jax.ShapeDtypeStruct((t, b, 2 * hd), jnp.float32),   # enc_out, time-major
        jax.ShapeDtypeStruct((b, hd), jnp.float32),          # h_reduced
        jax.ShapeDtypeStruct((b, hd), jnp.float32),          # c_reduced
    )
    enc_tbh, h_red, c_red = pl.pallas_call(
        encoder_kernel,
        out_shape=out_shapes,
        in_specs=[vmem] * 6,
        out_specs=(vmem, vmem, vmem),
    )(xx, w_in, whh, lens2, w_red, b_red)

    enc_out = jnp.transpose(enc_tbh, (1, 0, 2))              # (B, T, 2H), batch-first
    # pad_packed_sequence pads to max(seq_lens) == max_enc_len (static, jit-safe slice)
    return enc_out[:, :max_enc_len], (h_red, c_red)


def init_params(key):
    """Deterministic synthetic init (stands in for init_lstm_wt / init_linear_wt)."""
    ks = jax.random.split(key, 10)
    h4 = 4 * HIDDEN_DIM

    def u(k, shape, scale):
        return jax.random.uniform(k, shape, jnp.float32, -scale, scale)

    return dict(
        wih_f=u(ks[0], (EMB_DIM, h4), 0.08),             # W_ih^T, forward dir
        whh_f=u(ks[1], (HIDDEN_DIM, h4), 0.08),          # W_hh^T
        b_f=u(ks[2], (1, h4), 0.08),                     # b_ih + b_hh folded
        wih_b=u(ks[3], (EMB_DIM, h4), 0.08),             # backward dir
        whh_b=u(ks[4], (HIDDEN_DIM, h4), 0.08),
        b_b=u(ks[5], (1, h4), 0.08),
        wrh=u(ks[6], (2 * HIDDEN_DIM, HIDDEN_DIM), 0.1),  # reduce_h weight^T
        brh=u(ks[7], (1, HIDDEN_DIM), 0.1),
        wrc=u(ks[8], (2 * HIDDEN_DIM, HIDDEN_DIM), 0.1),  # reduce_c weight^T
        brc=u(ks[9], (1, HIDDEN_DIM), 0.1),
    )


def encoder_ref(params, x, seq_lens, max_enc_len):
    """Pure-JAX reference mirroring the PyTorch forward (for self-check)."""
    b, t, _ = x.shape
    hdim = HIDDEN_DIM
    x_tbe = jnp.transpose(x, (1, 0, 2)).astype(jnp.float32)
    mask = (jnp.arange(t)[:, None] < seq_lens[None, :]).astype(jnp.float32)[:, :, None]

    def run_dir(wih, whh, bias, reverse):
        def step(carry, inp):
            h, c = carry
            x_t, m = inp
            gates = x_t @ wih + h @ whh + bias
            i = jax.nn.sigmoid(gates[:, :hdim])
            f = jax.nn.sigmoid(gates[:, hdim:2 * hdim])
            g = jnp.tanh(gates[:, 2 * hdim:3 * hdim])
            o = jax.nn.sigmoid(gates[:, 3 * hdim:])
            c_new = f * c + i * g
            h_new = o * jnp.tanh(c_new)
            h = jnp.where(m > 0, h_new, h)
            c = jnp.where(m > 0, c_new, c)
            return (h, c), h * m

        init = (jnp.zeros((b, hdim), jnp.float32), jnp.zeros((b, hdim), jnp.float32))
        (h, c), outs = lax.scan(step, init, (x_tbe, mask), reverse=reverse)
        return h, c, outs

    hf, cf, out_f = run_dir(params["wih_f"], params["whh_f"], params["b_f"], False)
    hb, cb, out_b = run_dir(params["wih_b"], params["whh_b"], params["b_b"], True)
    enc_out = jnp.transpose(jnp.concatenate([out_f, out_b], -1), (1, 0, 2))
    h_cat = jnp.concatenate([hf, hb], -1)
    c_cat = jnp.concatenate([cf, cb], -1)
    h_red = jnp.maximum(h_cat @ params["wrh"] + params["brh"], 0.0)
    c_red = jnp.maximum(c_cat @ params["wrc"] + params["brc"], 0.0)
    return enc_out[:, :max_enc_len], (h_red, c_red)


if __name__ == "__main__":
    key = jax.random.PRNGKey(0)
    pkey, xkey = jax.random.split(key)
    params = init_params(pkey)

    x = jax.random.normal(xkey, (BATCH, SEQ, EMB_DIM), jnp.float32)
    # pack_padded_sequence requires lengths sorted descending; max == SEQ == max_enc_len
    seq_lens = jnp.array([SEQ, SEQ - 3], dtype=jnp.int32)
    max_enc_len = SEQ

    enc_out, (h_red, c_red) = encoder_forward(params, x, seq_lens, max_enc_len)
    jax.block_until_ready((enc_out, h_red, c_red))

    ref_out, (ref_h, ref_c) = encoder_ref(params, x, seq_lens, max_enc_len)
    assert enc_out.shape == ref_out.shape == (BATCH, SEQ, 2 * HIDDEN_DIM)
    assert h_red.shape == (BATCH, HIDDEN_DIM) and c_red.shape == (BATCH, HIDDEN_DIM)
    assert jnp.allclose(enc_out, ref_out, atol=1e-4, rtol=1e-4)
    assert jnp.allclose(h_red, ref_h, atol=1e-4, rtol=1e-4)
    assert jnp.allclose(c_red, ref_c, atol=1e-4, rtol=1e-4)

    print("KERNEL_OK")
</pallas_src>

<mosaic_0001>
module attributes {stable_mosaic.version = 11 : i64} {
  func.func @encoder_kernel(%arg0: memref<32x128xf32, #tpu.memory_space<vmem>>, %arg1: memref<128x128xf32, #tpu.memory_space<vmem>>, %arg2: memref<64x128xf32, #tpu.memory_space<vmem>>, %arg3: memref<4x1xi32, #tpu.memory_space<vmem>>, %arg4: memref<128x64xf32, #tpu.memory_space<vmem>>, %arg5: memref<1x64xf32, #tpu.memory_space<vmem>>, %arg6: memref<8x2x64xf32, #tpu.memory_space<vmem>>, %arg7: memref<2x32xf32, #tpu.memory_space<vmem>>, %arg8: memref<2x32xf32, #tpu.memory_space<vmem>>) attributes {dimension_semantics = [], scalar_prefetch = 0 : i64, scratch_operands = 0 : i64, tpu.core_type = #tpu.core_type<tc>} {
    %c0 = arith.constant 0 : index
    %c0_0 = arith.constant 0 : index
    %0 = vector.load %arg0[%c0, %c0_0] : memref<32x128xf32, #tpu.memory_space<vmem>>, vector<32x128xf32>
    %c0_1 = arith.constant 0 : index
    %c0_2 = arith.constant 0 : index
    %1 = vector.load %arg1[%c0_1, %c0_2] : memref<128x128xf32, #tpu.memory_space<vmem>>, vector<128x128xf32>
    %cst = arith.constant dense<0.000000e+00> : vector<32x128xf32>
    %2 = tpu.matmul %0, %1, %cst {dimension_numbers = #tpu.dot_dimension_numbers<[1], [0], [0], [1], [0, 0, 1, 1], [], []>} : vector<32x128xf32>, vector<128x128xf32>, vector<32x128xf32> -> vector<32x128xf32>
    %c0_3 = arith.constant 0 : index
    %c0_4 = arith.constant 0 : index
    %3 = vector.load %arg2[%c0_3, %c0_4] : memref<64x128xf32, #tpu.memory_space<vmem>>, vector<64x128xf32>
    %c0_5 = arith.constant 0 : index
    %c0_6 = arith.constant 0 : index
    %4 = vector.load %arg3[%c0_5, %c0_6] : memref<4x1xi32, #tpu.memory_space<vmem>>, vector<4x1xi32>
    %5 = tpu.iota {dimensions = array<i32: 0>} : vector<4x1xi32>
    %c2_i32 = arith.constant 2 : i32
    %6 = vector.broadcast %c2_i32 : i32 to vector<4x1xi32>
    %7 = arith.cmpi slt, %5, %6 : vector<4x1xi32>
    %8 = tpu.iota {dimensions = array<i32: 0>} : vector<4x64xi32>
    %9 = tpu.iota {dimensions = array<i32: 1>} : vector<4x64xi32>
    %c2_i32_7 = arith.constant 2 : i32
    %10 = vector.broadcast %c2_i32_7 : i32 to vector<4x64xi32>
    %11 = arith.cmpi slt, %8, %10 : vector<4x64xi32>
    %c32_i32 = arith.constant 32 : i32
    %12 = vector.broadcast %c32_i32 : i32 to vector<4x64xi32>
    %13 = arith.cmpi slt, %9, %12 : vector<4x64xi32>
    %14 = arith.xori %11, %13 : vector<4x64xi1>
    %cst_8 = arith.constant dense<true> : vector<4x64xi1>
    %15 = arith.xori %14, %cst_8 : vector<4x64xi1>
    %16 = arith.extui %15 : vector<4x64xi1> to vector<4x64xi32>
    %17 = arith.sitofp %16 : vector<4x64xi32> to vector<4x64xf32>
    %cst_9 = arith.constant 0.000000e+00 : f32
    %18 = vector.broadcast %cst_9 : f32 to vector<4x32xf32>
    %cst_10 = arith.constant 0.000000e+00 : f32
    %19 = vector.broadcast %cst_10 : f32 to vector<4x32xf32>
    %20 = tpu.concatenate %18, %18 in 1 : vector<4x32xf32>, vector<4x32xf32> -> vector<4x64xf32>
    %21 = arith.mulf %20, %17 : vector<4x64xf32>
    %22 = vector.extract_strided_slice %2 {offsets = [0, 0], sizes = [4, 128], strides = [1, 1]} : vector<32x128xf32> to vector<4x128xf32>
    %cst_11 = arith.constant dense<0.000000e+00> : vector<4x128xf32>
    %23 = tpu.matmul %21, %3, %cst_11 {dimension_numbers = #tpu.dot_dimension_numbers<[1], [0], [0], [1], [0, 0, 1, 1], [], []>} : vector<4x64xf32>, vector<64x128xf32>, vector<4x128xf32> -> vector<4x128xf32>
    %24 = arith.addf %22, %23 : vector<4x128xf32>
    %25 = arith.negf %24 : vector<4x128xf32>
    %26 = math.exp %25 : vector<4x128xf32>
    %cst_12 = arith.constant 1.000000e+00 : f32
    %27 = vector.broadcast %cst_12 : f32 to vector<4x128xf32>
    %28 = arith.addf %27, %26 : vector<4x128xf32>
    %29 = arith.divf %27, %28 : vector<4x128xf32>
    %30 = vector.extract_strided_slice %29 {offsets = [0, 0], sizes = [4, 32], strides = [1, 1]} : vector<4x128xf32> to vector<4x32xf32>
    %31 = vector.extract_strided_slice %29 {offsets = [0, 32], sizes = [4, 32], strides = [1, 1]} : vector<4x128xf32> to vector<4x32xf32>
    %32 = vector.extract_strided_slice %29 {offsets = [0, 96], sizes = [4, 32], strides = [1, 1]} : vector<4x128xf32> to vector<4x32xf32>
    %33 = vector.extract_strided_slice %24 {offsets = [0, 64], sizes = [4, 32], strides = [1, 1]} : vector<4x128xf32> to vector<4x32xf32>
    %34 = math.tanh %33 : vector<4x32xf32>
    %35 = arith.mulf %31, %19 : vector<4x32xf32>
    %36 = arith.mulf %30, %34 : vector<4x32xf32>
    %37 = arith.addf %35, %36 : vector<4x32xf32>
    %38 = math.tanh %37 : vector<4x32xf32>
    %39 = arith.mulf %32, %38 : vector<4x32xf32>
    %c0_i32 = arith.constant 0 : i32
    %c7_i32 = arith.constant 7 : i32
    %40 = vector.broadcast %c0_i32 : i32 to vector<4x1xi32>
    %41 = vector.broadcast %c7_i32 : i32 to vector<4x1xi32>
    %42 = arith.select %7, %40, %41 : vector<4x1xi1>, vector<4x1xi32>
    %43 = arith.cmpi slt, %42, %4 : vector<4x1xi32>
    %44 = vector.shape_cast %43 : vector<4x1xi1> to vector<4x1xi1>
    %45 = vector.broadcast %44 : vector<4x1xi1> to vector<4x32xi1>
    %46 = arith.select %45, %39, %18 : vector<4x32xi1>, vector<4x32xf32>
    %47 = vector.shape_cast %43 : vector<4x1xi1> to vector<4x1xi1>
    %48 = vector.broadcast %47 : vector<4x1xi1> to vector<4x32xi1>
    %49 = arith.select %48, %37, %19 : vector<4x32xi1>, vector<4x32xf32>
    %cst_13 = arith.constant 0.000000e+00 : f32
    %50 = vector.shape_cast %43 : vector<4x1xi1> to vector<4x1xi1>
    %51 = vector.broadcast %50 : vector<4x1xi1> to vector<4x32xi1>
    %52 = vector.broadcast %cst_13 : f32 to vector<4x32xf32>
    %53 = arith.select %51, %39, %52 : vector<4x32xi1>, vector<4x32xf32>
    %54 = vector.extract_strided_slice %53 {offsets = [0, 0], sizes = [2, 32], strides = [1, 1]} : vector<4x32xf32> to vector<2x32xf32>
    %c0_14 = arith.constant 0 : index
    %c0_15 = arith.constant 0 : index
    %c0_16 = arith.constant 0 : index
    %55 = vector.load %arg6[%c0_14, %c0_15, %c0_16] : memref<8x2x64xf32, #tpu.memory_space<vmem>>, vector<1x2x32xf32>
    %56 = vector.shape_cast %55 : vector<1x2x32xf32> to vector<2x32xf32>
    %57 = vector.shape_cast %54 : vector<2x32xf32> to vector<1x2x32xf32>
    tpu.vector_store %arg6[%c0_14, %c0_15, %c0_16], %57 {strides = array<i32>} : memref<8x2x64xf32, #tpu.memory_space<vmem>>, vector<1x2x32xf32>,
    %58 = vector.extract_strided_slice %53 {offsets = [2, 0], sizes = [2, 32], strides = [1, 1]} : vector<4x32xf32> to vector<2x32xf32>
    %c7 = arith.constant 7 : index
    %c0_17 = arith.constant 0 : index
    %c32 = arith.constant 32 : index
    %59 = vector.load %arg6[%c7, %c0_17, %c32] : memref<8x2x64xf32, #tpu.memory_space<vmem>>, vector<1x2x32xf32>
    %60 = vector.shape_cast %59 : vector<1x2x32xf32> to vector<2x32xf32>
    %61 = vector.shape_cast %58 : vector<2x32xf32> to vector<1x2x32xf32>
    tpu.vector_store %arg6[%c7, %c0_17, %c32], %61 {strides = array<i32>} : memref<8x2x64xf32, #tpu.memory_space<vmem>>, vector<1x2x32xf32>,
    %62 = tpu.concatenate %46, %46 in 1 : vector<4x32xf32>, vector<4x32xf32> -> vector<4x64xf32>
    %63 = arith.mulf %62, %17 : vector<4x64xf32>
    %64 = vector.extract_strided_slice %2 {offsets = [4, 0], sizes = [4, 128], strides = [1, 1]} : vector<32x128xf32> to vector<4x128xf32>
    %cst_18 = arith.constant dense<0.000000e+00> : vector<4x128xf32>
    %65 = tpu.matmul %63, %3, %cst_18 {dimension_numbers = #tpu.dot_dimension_numbers<[1], [0], [0], [1], [0, 0, 1, 1], [], []>} : vector<4x64xf32>, vector<64x128xf32>, vector<4x128xf32> -> vector<4x128xf32>
    %66 = arith.addf %64, %65 : vector<4x128xf32>
    %67 = arith.negf %66 : vector<4x128xf32>
    %68 = math.exp %67 : vector<4x128xf32>
    %cst_19 = arith.constant 1.000000e+00 : f32
    %69 = vector.broadcast %cst_19 : f32 to vector<4x128xf32>
    %70 = arith.addf %69, %68 : vector<4x128xf32>
    %71 = arith.divf %69, %70 : vector<4x128xf32>
    %72 = vector.extract_strided_slice %71 {offsets = [0, 0], sizes = [4, 32], strides = [1, 1]} : vector<4x128xf32> to vector<4x32xf32>
    %73 = vector.extract_strided_slice %71 {offsets = [0, 32], sizes = [4, 32], strides = [1, 1]} : vector<4x128xf32> to vector<4x32xf32>
    %74 = vector.extract_strided_slice %71 {offsets = [0, 96], sizes = [4, 32], strides = [1, 1]} : vector<4x128xf32> to vector<4x32xf32>
    %75 = vector.extract_strided_slice %66 {offsets = [0, 64], sizes = [4, 32], strides = [1, 1]} : vector<4x128xf32> to vector<4x32xf32>
    %76 = math.tanh %75 : vector<4x32xf32>
    %77 = arith.mulf %73, %49 : vector<4x32xf32>
    %78 = arith.mulf %72, %76 : vector<4x32xf32>
    %79 = arith.addf %77, %78 : vector<4x32xf32>
    %80 = math.tanh %79 : vector<4x32xf32>
    %81 = arith.mulf %74, %80 : vector<4x32xf32>
    %c1_i32 = arith.constant 1 : i32
    %c6_i32 = arith.constant 6 : i32
    %82 = vector.broadcast %c1_i32 : i32 to vector<4x1xi32>
    %83 = vector.broadcast %c6_i32 : i32 to vector<4x1xi32>
    %84 = arith.select %7, %82, %83 : vector<4x1xi1>, vector<4x1xi32>
    %85 = arith.cmpi slt, %84, %4 : vector<4x1xi32>
    %86 = vector.shape_cast %85 : vector<4x1xi1> to vector<4x1xi1>
    %87 = vector.broadcast %86 : vector<4x1xi1> to vector<4x32xi1>
    %88 = arith.select %87, %81, %46 : vector<4x32xi1>, vector<4x32xf32>
    %89 = vector.shape_cast %85 : vector<4x1xi1> to vector<4x1xi1>
    %90 = vector.broadcast %89 : vector<4x1xi1> to vector<4x32xi1>
    %91 = arith.select %90, %79, %49 : vector<4x32xi1>, vector<4x32xf32>
    %cst_20 = arith.constant 0.000000e+00 : f32
    %92 = vector.shape_cast %85 : vector<4x1xi1> to vector<4x1xi1>
    %93 = vector.broadcast %92 : vector<4x1xi1> to vector<4x32xi1>
    %94 = vector.broadcast %cst_20 : f32 to vector<4x32xf32>
    %95 = arith.select %93, %81, %94 : vector<4x32xi1>, vector<4x32xf32>
    %96 = vector.extract_strided_slice %95 {offsets = [0, 0], sizes = [2, 32], strides = [1, 1]} : vector<4x32xf32> to vector<2x32xf32>
    %c1 = arith.constant 1 : index
    %c0_21 = arith.constant 0 : index
    %c0_22 = arith.constant 0 : index
    %97 = vector.load %arg6[%c1, %c0_21, %c0_22] : memref<8x2x64xf32, #tpu.memory_space<vmem>>, vector<1x2x32xf32>
    %98 = vector.shape_cast %97 : vector<1x2x32xf32> to vector<2x32xf32>
    %99 = vector.shape_cast %96 : vector<2x32xf32> to vector<1x2x32xf32>
    tpu.vector_store %arg6[%c1, %c0_21, %c0_22], %99 {strides = array<i32>} : memref<8x2x64xf32, #tpu.memory_space<vmem>>, vector<1x2x32xf32>,
    %100 = vector.extract_strided_slice %95 {offsets = [2, 0], sizes = [2, 32], strides = [1, 1]} : vector<4x32xf32> to vector<2x32xf32>
    %c6 = arith.constant 6 : index
    %c0_23 = arith.constant 0 : index
    %c32_24 = arith.constant 32 : index
    %101 = vector.load %arg6[%c6, %c0_23, %c32_24] : memref<8x2x64xf32, #tpu.memory_space<vmem>>, vector<1x2x32xf32>
    %102 = vector.shape_cast %101 : vector<1x2x32xf32> to vector<2x32xf32>
    %103 = vector.shape_cast %100 : vector<2x32xf32> to vector<1x2x32xf32>
    tpu.vector_store %arg6[%c6, %c0_23, %c32_24], %103 {strides = array<i32>} : memref<8x2x64xf32, #tpu.memory_space<vmem>>, vector<1x2x32xf32>,
    %104 = tpu.concatenate %88, %88 in 1 : vector<4x32xf32>, vector<4x32xf32> -> vector<4x64xf32>
    %105 = arith.mulf %104, %17 : vector<4x64xf32>
    %106 = vector.extract_strided_slice %2 {offsets = [8, 0], sizes = [4, 128], strides = [1, 1]} : vector<32x128xf32> to vector<4x128xf32>
    %cst_25 = arith.constant dense<0.000000e+00> : vector<4x128xf32>
    %107 = tpu.matmul %105, %3, %cst_25 {dimension_numbers = #tpu.dot_dimension_numbers<[1], [0], [0], [1], [0, 0, 1, 1], [], []>} : vector<4x64xf32>, vector<64x128xf32>, vector<4x128xf32> -> vector<4x128xf32>
    %108 = arith.addf %106, %107 : vector<4x128xf32>
    %109 = arith.negf %108 : vector<4x128xf32>
    %110 = math.exp %109 : vector<4x128xf32>
    %cst_26 = arith.constant 1.000000e+00 : f32
    %111 = vector.broadcast %cst_26 : f32 to vector<4x128xf32>
    %112 = arith.addf %111, %110 : vector<4x128xf32>
    %113 = arith.divf %111, %112 : vector<4x128xf32>
    %114 = vector.extract_strided_slice %113 {offsets = [0, 0], sizes = [4, 32], strides = [1, 1]} : vector<4x128xf32> to vector<4x32xf32>
    %115 = vector.extract_strided_slice %113 {offsets = [0, 32], sizes = [4, 32], strides = [1, 1]} : vector<4x128xf32> to vector<4x32xf32>
    %116 = vector.extract_strided_slice %113 {offsets = [0, 96], sizes = [4, 32], strides = [1, 1]} : vector<4x128xf32> to vector<4x32xf32>
    %117 = vector.extract_strided_slice %108 {offsets = [0, 64], sizes = [4, 32], strides = [1, 1]} : vector<4x128xf32> to vector<4x32xf32>
    %118 = math.tanh %117 : vector<4x32xf32>
    %119 = arith.mulf %115, %91 : vector<4x32xf32>
    %120 = arith.mulf %114, %118 : vector<4x32xf32>
    %121 = arith.addf %119, %120 : vector<4x32xf32>
    %122 = math.tanh %121 : vector<4x32xf32>
    %123 = arith.mulf %116, %122 : vector<4x32xf32>
    %c2_i32_27 = arith.constant 2 : i32
    %c5_i32 = arith.constant 5 : i32
    %124 = vector.broadcast %c2_i32_27 : i32 to vector<4x1xi32>
    %125 = vector.broadcast %c5_i32 : i32 to vector<4x1xi32>
    %126 = arith.select %7, %124, %125 : vector<4x1xi1>, vector<4x1xi32>
    %127 = arith.cmpi slt, %126, %4 : vector<4x1xi32>
    %128 = vector.shape_cast %127 : vector<4x1xi1> to vector<4x1xi1>
    %129 = vector.broadcast %128 : vector<4x1xi1> to vector<4x32xi1>
    %130 = arith.select %129, %123, %88 : vector<4x32xi1>, vector<4x32xf32>
    %131 = vector.shape_cast %127 : vector<4x1xi1> to vector<4x1xi1>
    %132 = vector.broadcast %131 : vector<4x1xi1> to vector<4x32xi1>
    %133 = arith.select %132, %121, %91 : vector<4x32xi1>, vector<4x32xf32>
    %cst_28 = arith.constant 0.000000e+00 : f32
    %134 = vector.shape_cast %127 : vector<4x1xi1> to vector<4x1xi1>
    %135 = vector.broadcast %134 : vector<4x1xi1> to vector<4x32xi1>
    %136 = vector.broadcast %cst_28 : f32 to vector<4x32xf32>
    %137 = arith.select %135, %123, %136 : vector<4x32xi1>, vector<4x32xf32>
    %138 = vector.extract_strided_slice %137 {offsets = [0, 0], sizes = [2, 32], strides = [1, 1]} : vector<4x32xf32> to vector<2x32xf32>
    %c2 = arith.constant 2 : index
    %c0_29 = arith.constant 0 : index
    %c0_30 = arith.constant 0 : index
    %139 = vector.load %arg6[%c2, %c0_29, %c0_30] : memref<8x2x64xf32, #tpu.memory_space<vmem>>, vector<1x2x32xf32>
    %140 = vector.shape_cast %139 : vector<1x2x32xf32> to vector<2x32xf32>
    %141 = vector.shape_cast %138 : vector<2x32xf32> to vector<1x2x32xf32>
    tpu.vector_store %arg6[%c2, %c0_29, %c0_30], %141 {strides = array<i32>} : memref<8x2x64xf32, #tpu.memory_space<vmem>>, vector<1x2x32xf32>,
    %142 = vector.extract_strided_slice %137 {offsets = [2, 0], sizes = [2, 32], strides = [1, 1]} : vector<4x32xf32> to vector<2x32xf32>
    %c5 = arith.constant 5 : index
    %c0_31 = arith.constant 0 : index
    %c32_32 = arith.constant 32 : index
    %143 = vector.load %arg6[%c5, %c0_31, %c32_32] : memref<8x2x64xf32, #tpu.memory_space<vmem>>, vector<1x2x32xf32>
    %144 = vector.shape_cast %143 : vector<1x2x32xf32> to vector<2x32xf32>
    %145 = vector.shape_cast %142 : vector<2x32xf32> to vector<1x2x32xf32>
    tpu.vector_store %arg6[%c5, %c0_31, %c32_32], %145 {strides = array<i32>} : memref<8x2x64xf32, #tpu.memory_space<vmem>>, vector<1x2x32xf32>,
    %146 = tpu.concatenate %130, %130 in 1 : vector<4x32xf32>, vector<4x32xf32> -> vector<4x64xf32>
    %147 = arith.mulf %146, %17 : vector<4x64xf32>
    %148 = vector.extract_strided_slice %2 {offsets = [12, 0], sizes = [4, 128], strides = [1, 1]} : vector<32x128xf32> to vector<4x128xf32>
    %cst_33 = arith.constant dense<0.000000e+00> : vector<4x128xf32>
    %149 = tpu.matmul %147, %3, %cst_33 {dimension_numbers = #tpu.dot_dimension_numbers<[1], [0], [0], [1], [0, 0, 1, 1], [], []>} : vector<4x64xf32>, vector<64x128xf32>, vector<4x128xf32> -> vector<4x128xf32>
    %150 = arith.addf %148, %149 : vector<4x128xf32>
    %151 = arith.negf %150 : vector<4x128xf32>
    %152 = math.exp %151 : vector<4x128xf32>
    %cst_34 = arith.constant 1.000000e+00 : f32
    %153 = vector.broadcast %cst_34 : f32 to vector<4x128xf32>
    %154 = arith.addf %153, %152 : vector<4x128xf32>
    %155 = arith.divf %153, %154 : vector<4x128xf32>
    %156 = vector.extract_strided_slice %155 {offsets = [0, 0], sizes = [4, 32], strides = [1, 1]} : vector<4x128xf32> to vector<4x32xf32>
    %157 = vector.extract_strided_slice %155 {offsets = [0, 32], sizes = [4, 32], strides = [1, 1]} : vector<4x128xf32> to vector<4x32xf32>
    %158 = vector.extract_strided_slice %155 {offsets = [0, 96], sizes = [4, 32], strides = [1, 1]} : vector<4x128xf32> to vector<4x32xf32>
    %159 = vector.extract_strided_slice %150 {offsets = [0, 64], sizes = [4, 32], strides = [1, 1]} : vector<4x128xf32> to vector<4x32xf32>
    %160 = math.tanh %159 : vector<4x32xf32>
    %161 = arith.mulf %157, %133 : vector<4x32xf32>
    %162 = arith.mulf %156, %160 : vector<4x32xf32>
    %163 = arith.addf %161, %162 : vector<4x32xf32>
    %164 = math.tanh %163 : vector<4x32xf32>
    %165 = arith.mulf %158, %164 : vector<4x32xf32>
    %c3_i32 = arith.constant 3 : i32
    %c4_i32 = arith.constant 4 : i32
    %166 = vector.broadcast %c3_i32 : i32 to vector<4x1xi32>
    %167 = vector.broadcast %c4_i32 : i32 to vector<4x1xi32>
    %168 = arith.select %7, %166, %167 : vector<4x1xi1>, vector<4x1xi32>
    %169 = arith.cmpi slt, %168, %4 : vector<4x1xi32>
    %170 = vector.shape_cast %169 : vector<4x1xi1> to vector<4x1xi1>
    %171 = vector.broadcast %170 : vector<4x1xi1> to vector<4x32xi1>
    %172 = arith.select %171, %165, %130 : vector<4x32xi1>, vector<4x32xf32>
    %173 = vector.shape_cast %169 : vector<4x1xi1> to vector<4x1xi1>
    %174 = vector.broadcast %173 : vector<4x1xi1> to vector<4x32xi1>
    %175 = arith.select %174, %163, %133 : vector<4x32xi1>, vector<4x32xf32>
    %cst_35 = arith.constant 0.000000e+00 : f32
    %176 = vector.shape_cast %169 : vector<4x1xi1> to vector<4x1xi1>
    %177 = vector.broadcast %176 : vector<4x1xi1> to vector<4x32xi1>
    %178 = vector.broadcast %cst_35 : f32 to vector<4x32xf32>
    %179 = arith.select %177, %165, %178 : vector<4x32xi1>, vector<4x32xf32>
    %180 = vector.extract_strided_slice %179 {offsets = [0, 0], sizes = [2, 32], strides = [1, 1]} : vector<4x32xf32> to vector<2x32xf32>
    %c3 = arith.constant 3 : index
    %c0_36 = arith.constant 0 : index
    %c0_37 = arith.constant 0 : index
    %181 = vector.load %arg6[%c3, %c0_36, %c0_37] : memref<8x2x64xf32, #tpu.memory_space<vmem>>, vector<1x2x32xf32>
    %182 = vector.shape_cast %181 : vector<1x2x32xf32> to vector<2x32xf32>
    %183 = vector.shape_cast %180 : vector<2x32xf32> to vector<1x2x32xf32>
    tpu.vector_store %arg6[%c3, %c0_36, %c0_37], %183 {strides = array<i32>} : memref<8x2x64xf32, #tpu.memory_space<vmem>>, vector<1x2x32xf32>,
    %184 = vector.extract_strided_slice %179 {offsets = [2, 0], sizes = [2, 32], strides = [1, 1]} : vector<4x32xf32> to vector<2x32xf32>
    %c4 = arith.constant 4 : index
    %c0_38 = arith.constant 0 : index
    %c32_39 = arith.constant 32 : index
    %185 = vector.load %arg6[%c4, %c0_38, %c32_39] : memref<8x2x64xf32, #tpu.memory_space<vmem>>, vector<1x2x32xf32>
    %186 = vector.shape_cast %185 : vector<1x2x32xf32> to vector<2x32xf32>
    %187 = vector.shape_cast %184 : vector<2x32xf32> to vector<1x2x32xf32>
    tpu.vector_store %arg6[%c4, %c0_38, %c32_39], %187 {strides = array<i32>} : memref<8x2x64xf32, #tpu.memory_space<vmem>>, vector<1x2x32xf32>,
    %188 = tpu.concatenate %172, %172 in 1 : vector<4x32xf32>, vector<4x32xf32> -> vector<4x64xf32>
    %189 = arith.mulf %188, %17 : vector<4x64xf32>
    %190 = vector.extract_strided_slice %2 {offsets = [16, 0], sizes = [4, 128], strides = [1, 1]} : vector<32x128xf32> to vector<4x128xf32>
    %cst_40 = arith.constant dense<0.000000e+00> : vector<4x128xf32>
    %191 = tpu.matmul %189, %3, %cst_40 {dimension_numbers = #tpu.dot_dimension_numbers<[1], [0], [0], [1], [0, 0, 1, 1], [], []>} : vector<4x64xf32>, vector<64x128xf32>, vector<4x128xf32> -> vector<4x128xf32>
    %192 = arith.addf %190, %191 : vector<4x128xf32>
    %193 = arith.negf %192 : vector<4x128xf32>
    %194 = math.exp %193 : vector<4x128xf32>
    %cst_41 = arith.constant 1.000000e+00 : f32
    %195 = vector.broadcast %cst_41 : f32 to vector<4x128xf32>
    %196 = arith.addf %195, %194 : vector<4x128xf32>
    %197 = arith.divf %195, %196 : vector<4x128xf32>
    %198 = vector.extract_strided_slice %197 {offsets = [0, 0], sizes = [4, 32], strides = [1, 1]} : vector<4x128xf32> to vector<4x32xf32>
    %199 = vector.extract_strided_slice %197 {offsets = [0, 32], sizes = [4, 32], strides = [1, 1]} : vector<4x128xf32> to vector<4x32xf32>
    %200 = vector.extract_strided_slice %197 {offsets = [0, 96], sizes = [4, 32], strides = [1, 1]} : vector<4x128xf32> to vector<4x32xf32>
    %201 = vector.extract_strided_slice %192 {offsets = [0, 64], sizes = [4, 32], strides = [1, 1]} : vector<4x128xf32> to vector<4x32xf32>
    %202 = math.tanh %201 : vector<4x32xf32>
    %203 = arith.mulf %199, %175 : vector<4x32xf32>
    %204 = arith.mulf %198, %202 : vector<4x32xf32>
    %205 = arith.addf %203, %204 : vector<4x32xf32>
    %206 = math.tanh %205 : vector<4x32xf32>
    %207 = arith.mulf %200, %206 : vector<4x32xf32>
    %c4_i32_42 = arith.constant 4 : i32
    %c3_i32_43 = arith.constant 3 : i32
    %208 = vector.broadcast %c4_i32_42 : i32 to vector<4x1xi32>
    %209 = vector.broadcast %c3_i32_43 : i32 to vector<4x1xi32>
    %210 = arith.select %7, %208, %209 : vector<4x1xi1>, vector<4x1xi32>
    %211 = arith.cmpi slt, %210, %4 : vector<4x1xi32>
    %212 = vector.shape_cast %211 : vector<4x1xi1> to vector<4x1xi1>
    %213 = vector.broadcast %212 : vector<4x1xi1> to vector<4x32xi1>
    %214 = arith.select %213, %207, %172 : vector<4x32xi1>, vector<4x32xf32>
    %215 = vector.shape_cast %211 : vector<4x1xi1> to vector<4x1xi1>
    %216 = vector.broadcast %215 : vector<4x1xi1> to vector<4x32xi1>
    %217 = arith.select %216, %205, %175 : vector<4x32xi1>, vector<4x32xf32>
    %cst_44 = arith.constant 0.000000e+00 : f32
    %218 = vector.shape_cast %211 : vector<4x1xi1> to vector<4x1xi1>
    %219 = vector.broadcast %218 : vector<4x1xi1> to vector<4x32xi1>
    %220 = vector.broadcast %cst_44 : f32 to vector<4x32xf32>
    %221 = arith.select %219, %207, %220 : vector<4x32xi1>, vector<4x32xf32>
    %222 = vector.extract_strided_slice %221 {offsets = [0, 0], sizes = [2, 32], strides = [1, 1]} : vector<4x32xf32> to vector<2x32xf32>
    %c4_45 = arith.constant 4 : index
    %c0_46 = arith.constant 0 : index
    %c0_47 = arith.constant 0 : index
    %223 = vector.load %arg6[%c4_45, %c0_46, %c0_47] : memref<8x2x64xf32, #tpu.memory_space<vmem>>, vector<1x2x32xf32>
    %224 = vector.shape_cast %223 : vector<1x2x32xf32> to vector<2x32xf32>
    %225 = vector.shape_cast %222 : vector<2x32xf32> to vector<1x2x32xf32>
    tpu.vector_store %arg6[%c4_45, %c0_46, %c0_47], %225 {strides = array<i32>} : memref<8x2x64xf32, #tpu.memory_space<vmem>>, vector<1x2x32xf32>,
    %226 = vector.extract_strided_slice %221 {offsets = [2, 0], sizes = [2, 32], strides = [1, 1]} : vector<4x32xf32> to vector<2x32xf32>
    %c3_48 = arith.constant 3 : index
    %c0_49 = arith.constant 0 : index
    %c32_50 = arith.constant 32 : index
    %227 = vector.load %arg6[%c3_48, %c0_49, %c32_50] : memref<8x2x64xf32, #tpu.memory_space<vmem>>, vector<1x2x32xf32>
    %228 = vector.shape_cast %227 : vector<1x2x32xf32> to vector<2x32xf32>
    %229 = vector.shape_cast %226 : vector<2x32xf32> to vector<1x2x32xf32>
    tpu.vector_store %arg6[%c3_48, %c0_49, %c32_50], %229 {strides = array<i32>} : memref<8x2x64xf32, #tpu.memory_space<vmem>>, vector<1x2x32xf32>,
    %230 = tpu.concatenate %214, %214 in 1 : vector<4x32xf32>, vector<4x32xf32> -> vector<4x64xf32>
    %231 = arith.mulf %230, %17 : vector<4x64xf32>
    %232 = vector.extract_strided_slice %2 {offsets = [20, 0], sizes = [4, 128], strides = [1, 1]} : vector<32x128xf32> to vector<4x128xf32>
    %cst_51 = arith.constant dense<0.000000e+00> : vector<4x128xf32>
    %233 = tpu.matmul %231, %3, %cst_51 {dimension_numbers = #tpu.dot_dimension_numbers<[1], [0], [0], [1], [0, 0, 1, 1], [], []>} : vector<4x64xf32>, vector<64x128xf32>, vector<4x128xf32> -> vector<4x128xf32>
    %234 = arith.addf %232, %233 : vector<4x128xf32>
    %235 = arith.negf %234 : vector<4x128xf32>
    %236 = math.exp %235 : vector<4x128xf32>
    %cst_52 = arith.constant 1.000000e+00 : f32
    %237 = vector.broadcast %cst_52 : f32 to vector<4x128xf32>
    %238 = arith.addf %237, %236 : vector<4x128xf32>
    %239 = arith.divf %237, %238 : vector<4x128xf32>
    %240 = vector.extract_strided_slice %239 {offsets = [0, 0], sizes = [4, 32], strides = [1, 1]} : vector<4x128xf32> to vector<4x32xf32>
    %241 = vector.extract_strided_slice %239 {offsets = [0, 32], sizes = [4, 32], strides = [1, 1]} : vector<4x128xf32> to vector<4x32xf32>
    %242 = vector.extract_strided_slice %239 {offsets = [0, 96], sizes = [4, 32], strides = [1, 1]} : vector<4x128xf32> to vector<4x32xf32>
    %243 = vector.extract_strided_slice %234 {offsets = [0, 64], sizes = [4, 32], strides = [1, 1]} : vector<4x128xf32> to vector<4x32xf32>
    %244 = math.tanh %243 : vector<4x32xf32>
    %245 = arith.mulf %241, %217 : vector<4x32xf32>
    %246 = arith.mulf %240, %244 : vector<4x32xf32>
    %247 = arith.addf %245, %246 : vector<4x32xf32>
    %248 = math.tanh %247 : vector<4x32xf32>
    %249 = arith.mulf %242, %248 : vector<4x32xf32>
    %c5_i32_53 = arith.constant 5 : i32
    %c2_i32_54 = arith.constant 2 : i32
    %250 = vector.broadcast %c5_i32_53 : i32 to vector<4x1xi32>
    %251 = vector.broadcast %c2_i32_54 : i32 to vector<4x1xi32>
    %252 = arith.select %7, %250, %251 : vector<4x1xi1>, vector<4x1xi32>
    %253 = arith.cmpi slt, %252, %4 : vector<4x1xi32>
    %254 = vector.shape_cast %253 : vector<4x1xi1> to vector<4x1xi1>
    %255 = vector.broadcast %254 : vector<4x1xi1> to vector<4x32xi1>
    %256 = arith.select %255, %249, %214 : vector<4x32xi1>, vector<4x32xf32>
    %257 = vector.shape_cast %253 : vector<4x1xi1> to vector<4x1xi1>
    %258 = vector.broadcast %257 : vector<4x1xi1> to vector<4x32xi1>
    %259 = arith.select %258, %247, %217 : vector<4x32xi1>, vector<4x32xf32>
    %cst_55 = arith.constant 0.000000e+00 : f32
    %260 = vector.shape_cast %253 : vector<4x1xi1> to vector<4x1xi1>
    %261 = vector.broadcast %260 : vector<4x1xi1> to vector<4x32xi1>
    %262 = vector.broadcast %cst_55 : f32 to vector<4x32xf32>
    %263 = arith.select %261, %249, %262 : vector<4x32xi1>, vector<4x32xf32>
    %264 = vector.extract_strided_slice %263 {offsets = [0, 0], sizes = [2, 32], strides = [1, 1]} : vector<4x32xf32> to vector<2x32xf32>
    %c5_56 = arith.constant 5 : index
    %c0_57 = arith.constant 0 : index
    %c0_58 = arith.constant 0 : index
    %265 = vector.load %arg6[%c5_56, %c0_57, %c0_58] : memref<8x2x64xf32, #tpu.memory_space<vmem>>, vector<1x2x32xf32>
    %266 = vector.shape_cast %265 : vector<1x2x32xf32> to vector<2x32xf32>
    %267 = vector.shape_cast %264 : vector<2x32xf32> to vector<1x2x32xf32>
    tpu.vector_store %arg6[%c5_56, %c0_57, %c0_58], %267 {strides = array<i32>} : memref<8x2x64xf32, #tpu.memory_space<vmem>>, vector<1x2x32xf32>,
    %268 = vector.extract_strided_slice %263 {offsets = [2, 0], sizes = [2, 32], strides = [1, 1]} : vector<4x32xf32> to vector<2x32xf32>
    %c2_59 = arith.constant 2 : index
    %c0_60 = arith.constant 0 : index
    %c32_61 = arith.constant 32 : index
    %269 = vector.load %arg6[%c2_59, %c0_60, %c32_61] : memref<8x2x64xf32, #tpu.memory_space<vmem>>, vector<1x2x32xf32>
    %270 = vector.shape_cast %269 : vector<1x2x32xf32> to vector<2x32xf32>
    %271 = vector.shape_cast %268 : vector<2x32xf32> to vector<1x2x32xf32>
    tpu.vector_store %arg6[%c2_59, %c0_60, %c32_61], %271 {strides = array<i32>} : memref<8x2x64xf32, #tpu.memory_space<vmem>>, vector<1x2x32xf32>,
    %272 = tpu.concatenate %256, %256 in 1 : vector<4x32xf32>, vector<4x32xf32> -> vector<4x64xf32>
    %273 = arith.mulf %272, %17 : vector<4x64xf32>
    %274 = vector.extract_strided_slice %2 {offsets = [24, 0], sizes = [4, 128], strides = [1, 1]} : vector<32x128xf32> to vector<4x128xf32>
    %cst_62 = arith.constant dense<0.000000e+00> : vector<4x128xf32>
    %275 = tpu.matmul %273, %3, %cst_62 {dimension_numbers = #tpu.dot_dimension_numbers<[1], [0], [0], [1], [0, 0, 1, 1], [], []>} : vector<4x64xf32>, vector<64x128xf32>, vector<4x128xf32> -> vector<4x128xf32>
    %276 = arith.addf %274, %275 : vector<4x128xf32>
    %277 = arith.negf %276 : vector<4x128xf32>
    %278 = math.exp %277 : vector<4x128xf32>
    %cst_63 = arith.constant 1.000000e+00 : f32
    %279 = vector.broadcast %cst_63 : f32 to vector<4x128xf32>
    %280 = arith.addf %279, %278 : vector<4x128xf32>
    %281 = arith.divf %279, %280 : vector<4x128xf32>
    %282 = vector.extract_strided_slice %281 {offsets = [0, 0], sizes = [4, 32], strides = [1, 1]} : vector<4x128xf32> to vector<4x32xf32>
    %283 = vector.extract_strided_slice %281 {offsets = [0, 32], sizes = [4, 32], strides = [1, 1]} : vector<4x128xf32> to vector<4x32xf32>
    %284 = vector.extract_strided_slice %281 {offsets = [0, 96], sizes = [4, 32], strides = [1, 1]} : vector<4x128xf32> to vector<4x32xf32>
    %285 = vector.extract_strided_slice %276 {offsets = [0, 64], sizes = [4, 32], strides = [1, 1]} : vector<4x128xf32> to vector<4x32xf32>
    %286 = math.tanh %285 : vector<4x32xf32>
    %287 = arith.mulf %283, %259 : vector<4x32xf32>
    %288 = arith.mulf %282, %286 : vector<4x32xf32>
    %289 = arith.addf %287, %288 : vector<4x32xf32>
    %290 = math.tanh %289 : vector<4x32xf32>
    %291 = arith.mulf %284, %290 : vector<4x32xf32>
    %c6_i32_64 = arith.constant 6 : i32
    %c1_i32_65 = arith.constant 1 : i32
    %292 = vector.broadcast %c6_i32_64 : i32 to vector<4x1xi32>
    %293 = vector.broadcast %c1_i32_65 : i32 to vector<4x1xi32>
    %294 = arith.select %7, %292, %293 : vector<4x1xi1>, vector<4x1xi32>
    %295 = arith.cmpi slt, %294, %4 : vector<4x1xi32>
    %296 = vector.shape_cast %295 : vector<4x1xi1> to vector<4x1xi1>
    %297 = vector.broadcast %296 : vector<4x1xi1> to vector<4x32xi1>
    %298 = arith.select %297, %291, %256 : vector<4x32xi1>, vector<4x32xf32>
    %299 = vector.shape_cast %295 : vector<4x1xi1> to vector<4x1xi1>
    %300 = vector.broadcast %299 : vector<4x1xi1> to vector<4x32xi1>
    %301 = arith.select %300, %289, %259 : vector<4x32xi1>, vector<4x32xf32>
    %cst_66 = arith.constant 0.000000e+00 : f32
    %302 = vector.shape_cast %295 : vector<4x1xi1> to vector<4x1xi1>
    %303 = vector.broadcast %302 : vector<4x1xi1> to vector<4x32xi1>
    %304 = vector.broadcast %cst_66 : f32 to vector<4x32xf32>
    %305 = arith.select %303, %291, %304 : vector<4x32xi1>, vector<4x32xf32>
    %306 = vector.extract_strided_slice %305 {offsets = [0, 0], sizes = [2, 32], strides = [1, 1]} : vector<4x32xf32> to vector<2x32xf32>
    %c6_67 = arith.constant 6 : index
    %c0_68 = arith.constant 0 : index
    %c0_69 = arith.constant 0 : index
    %307 = vector.load %arg6[%c6_67, %c0_68, %c0_69] : memref<8x2x64xf32, #tpu.memory_space<vmem>>, vector<1x2x32xf32>
    %308 = vector.shape_cast %307 : vector<1x2x32xf32> to vector<2x32xf32>
    %309 = vector.shape_cast %306 : vector<2x32xf32> to vector<1x2x32xf32>
    tpu.vector_store %arg6[%c6_67, %c0_68, %c0_69], %309 {strides = array<i32>} : memref<8x2x64xf32, #tpu.memory_space<vmem>>, vector<1x2x32xf32>,
    %310 = vector.extract_strided_slice %305 {offsets = [2, 0], sizes = [2, 32], strides = [1, 1]} : vector<4x32xf32> to vector<2x32xf32>
    %c1_70 = arith.constant 1 : index
    %c0_71 = arith.constant 0 : index
    %c32_72 = arith.constant 32 : index
    %311 = vector.load %arg6[%c1_70, %c0_71, %c32_72] : memref<8x2x64xf32, #tpu.memory_space<vmem>>, vector<1x2x32xf32>
    %312 = vector.shape_cast %311 : vector<1x2x32xf32> to vector<2x32xf32>
    %313 = vector.shape_cast %310 : vector<2x32xf32> to vector<1x2x32xf32>
    tpu.vector_store %arg6[%c1_70, %c0_71, %c32_72], %313 {strides = array<i32>} : memref<8x2x64xf32, #tpu.memory_space<vmem>>, vector<1x2x32xf32>,
    %314 = tpu.concatenate %298, %298 in 1 : vector<4x32xf32>, vector<4x32xf32> -> vector<4x64xf32>
    %315 = arith.mulf %314, %17 : vector<4x64xf32>
    %316 = vector.extract_strided_slice %2 {offsets = [28, 0], sizes = [4, 128], strides = [1, 1]} : vector<32x128xf32> to vector<4x128xf32>
    %cst_73 = arith.constant dense<0.000000e+00> : vector<4x128xf32>
    %317 = tpu.matmul %315, %3, %cst_73 {dimension_numbers = #tpu.dot_dimension_numbers<[1], [0], [0], [1], [0, 0, 1, 1], [], []>} : vector<4x64xf32>, vector<64x128xf32>, vector<4x128xf32> -> vector<4x128xf32>
    %318 = arith.addf %316, %317 : vector<4x128xf32>
    %319 = arith.negf %318 : vector<4x128xf32>
    %320 = math.exp %319 : vector<4x128xf32>
    %cst_74 = arith.constant 1.000000e+00 : f32
    %321 = vector.broadcast %cst_74 : f32 to vector<4x128xf32>
    %322 = arith.addf %321, %320 : vector<4x128xf32>
    %323 = arith.divf %321, %322 : vector<4x128xf32>
    %324 = vector.extract_strided_slice %323 {offsets = [0, 0], sizes = [4, 32], strides = [1, 1]} : vector<4x128xf32> to vector<4x32xf32>
    %325 = vector.extract_strided_slice %323 {offsets = [0, 32], sizes = [4, 32], strides = [1, 1]} : vector<4x128xf32> to vector<4x32xf32>
    %326 = vector.extract_strided_slice %323 {offsets = [0, 96], sizes = [4, 32], strides = [1, 1]} : vector<4x128xf32> to vector<4x32xf32>
    %327 = vector.extract_strided_slice %318 {offsets = [0, 64], sizes = [4, 32], strides = [1, 1]} : vector<4x128xf32> to vector<4x32xf32>
    %328 = math.tanh %327 : vector<4x32xf32>
    %329 = arith.mulf %325, %301 : vector<4x32xf32>
    %330 = arith.mulf %324, %328 : vector<4x32xf32>
    %331 = arith.addf %329, %330 : vector<4x32xf32>
    %332 = math.tanh %331 : vector<4x32xf32>
    %333 = arith.mulf %326, %332 : vector<4x32xf32>
    %c7_i32_75 = arith.constant 7 : i32
    %c0_i32_76 = arith.constant 0 : i32
    %334 = vector.broadcast %c7_i32_75 : i32 to vector<4x1xi32>
    %335 = vector.broadcast %c0_i32_76 : i32 to vector<4x1xi32>
    %336 = arith.select %7, %334, %335 : vector<4x1xi1>, vector<4x1xi32>
    %337 = arith.cmpi slt, %336, %4 : vector<4x1xi32>
    %338 = vector.shape_cast %337 : vector<4x1xi1> to vector<4x1xi1>
    %339 = vector.broadcast %338 : vector<4x1xi1> to vector<4x32xi1>
    %340 = arith.select %339, %333, %298 : vector<4x32xi1>, vector<4x32xf32>
    %341 = vector.shape_cast %337 : vector<4x1xi1> to vector<4x1xi1>
    %342 = vector.broadcast %341 : vector<4x1xi1> to vector<4x32xi1>
    %343 = arith.select %342, %331, %301 : vector<4x32xi1>, vector<4x32xf32>
    %cst_77 = arith.constant 0.000000e+00 : f32
    %344 = vector.shape_cast %337 : vector<4x1xi1> to vector<4x1xi1>
    %345 = vector.broadcast %344 : vector<4x1xi1> to vector<4x32xi1>
    %346 = vector.broadcast %cst_77 : f32 to vector<4x32xf32>
    %347 = arith.select %345, %333, %346 : vector<4x32xi1>, vector<4x32xf32>
    %348 = vector.extract_strided_slice %347 {offsets = [0, 0], sizes = [2, 32], strides = [1, 1]} : vector<4x32xf32> to vector<2x32xf32>
    %c7_78 = arith.constant 7 : index
    %c0_79 = arith.constant 0 : index
    %c0_80 = arith.constant 0 : index
    %349 = vector.load %arg6[%c7_78, %c0_79, %c0_80] : memref<8x2x64xf32, #tpu.memory_space<vmem>>, vector<1x2x32xf32>
    %350 = vector.shape_cast %349 : vector<1x2x32xf32> to vector<2x32xf32>
    %351 = vector.shape_cast %348 : vector<2x32xf32> to vector<1x2x32xf32>
    tpu.vector_store %arg6[%c7_78, %c0_79, %c0_80], %351 {strides = array<i32>} : memref<8x2x64xf32, #tpu.memory_space<vmem>>, vector<1x2x32xf32>,
    %352 = vector.extract_strided_slice %347 {offsets = [2, 0], sizes = [2, 32], strides = [1, 1]} : vector<4x32xf32> to vector<2x32xf32>
    %c0_81 = arith.constant 0 : index
    %c0_82 = arith.constant 0 : index
    %c32_83 = arith.constant 32 : index
    %353 = vector.load %arg6[%c0_81, %c0_82, %c32_83] : memref<8x2x64xf32, #tpu.memory_space<vmem>>, vector<1x2x32xf32>
    %354 = vector.shape_cast %353 : vector<1x2x32xf32> to vector<2x32xf32>
    %355 = vector.shape_cast %352 : vector<2x32xf32> to vector<1x2x32xf32>
    tpu.vector_store %arg6[%c0_81, %c0_82, %c32_83], %355 {strides = array<i32>} : memref<8x2x64xf32, #tpu.memory_space<vmem>>, vector<1x2x32xf32>,
    %356 = vector.extract_strided_slice %340 {offsets = [0, 0], sizes = [2, 32], strides = [1, 1]} : vector<4x32xf32> to vector<2x32xf32>
    %357 = vector.extract_strided_slice %340 {offsets = [2, 0], sizes = [2, 32], strides = [1, 1]} : vector<4x32xf32> to vector<2x32xf32>
    %358 = vector.extract_strided_slice %343 {offsets = [0, 0], sizes = [2, 32], strides = [1, 1]} : vector<4x32xf32> to vector<2x32xf32>
    %359 = vector.extract_strided_slice %343 {offsets = [2, 0], sizes = [2, 32], strides = [1, 1]} : vector<4x32xf32> to vector<2x32xf32>
    %360 = tpu.concatenate %356, %357, %358, %359 in 1 : vector<2x32xf32>, vector<2x32xf32>, vector<2x32xf32>, vector<2x32xf32> -> vector<2x128xf32>
    %c0_84 = arith.constant 0 : index
    %c0_85 = arith.constant 0 : index
    %361 = vector.load %arg4[%c0_84, %c0_85] : memref<128x64xf32, #tpu.memory_space<vmem>>, vector<128x64xf32>
    %cst_86 = arith.constant dense<0.000000e+00> : vector<2x64xf32>
    %362 = tpu.matmul %360, %361, %cst_86 {dimension_numbers = #tpu.dot_dimension_numbers<[1], [0], [0], [1], [0, 0, 1, 1], [], []>} : vector<2x128xf32>, vector<128x64xf32>, vector<2x64xf32> -> vector<2x64xf32>
    %c0_87 = arith.constant 0 : index
    %c0_88 = arith.constant 0 : index
    %363 = vector.load %arg5[%c0_87, %c0_88] : memref<1x64xf32, #tpu.memory_space<vmem>>, vector<1x64xf32>
    %364 = vector.broadcast %363 : vector<1x64xf32> to vector<2x64xf32>
    %365 = arith.addf %362, %364 : vector<2x64xf32>
    %cst_89 = arith.constant 0.000000e+00 : f32
    %366 = vector.broadcast %cst_89 : f32 to vector<2x64xf32>
    %367 = arith.maximumf %365, %366 : vector<2x64xf32>
    %368 = vector.extract_strided_slice %367 {offsets = [0, 0], sizes = [2, 32], strides = [1, 1]} : vector<2x64xf32> to vector<2x32xf32>
    %c0_90 = arith.constant 0 : index
    %c0_91 = arith.constant 0 : index
    %369 = vector.load %arg7[%c0_90, %c0_91] : memref<2x32xf32, #tpu.memory_space<vmem>>, vector<2x32xf32>
    tpu.vector_store %arg7[%c0_90, %c0_91], %368 {strides = array<i32>} : memref<2x32xf32, #tpu.memory_space<vmem>>, vector<2x32xf32>,
    %370 = vector.extract_strided_slice %367 {offsets = [0, 32], sizes = [2, 32], strides = [1, 1]} : vector<2x64xf32> to vector<2x32xf32>
    %c0_92 = arith.constant 0 : index
    %c0_93 = arith.constant 0 : index
    %371 = vector.load %arg8[%c0_92, %c0_93] : memref<2x32xf32, #tpu.memory_space<vmem>>, vector<2x32xf32>
    tpu.vector_store %arg8[%c0_92, %c0_93], %370 {strides = array<i32>} : memref<2x32xf32, #tpu.memory_space<vmem>>, vector<2x32xf32>,
    return
  }
}

</mosaic_0001>

<bundles_post_ra>
// kernel: tpu_custom_call.1
= control target key start
LH: loop header
LB: loop body
LE: loop exit
PB: predicated region body
PF: predicated region fallthrough
CT: control target
= control target key end

     0   :  { %14 = vsyncpa [#allocation3], 0  ;;  %s2689_s0 = inlined_call_operand.hbm [shape: f32[32,128], index: 0, kind: input, shape index: {}]   ;;  %s2690_s1 = inlined_call_operand.vmem [shape: f32[128,128], index: 1, kind: input, shape index: {}]   ;;  %s2691_s2 = inlined_call_operand.vmem [shape: f32[64,128], index: 2, kind: input, shape index: {}]   ;;  %s2692_s3 = inlined_call_operand.vmem [shape: s32[4,1], index: 3, kind: input, shape index: {}]   ;;  %s2693_s4 = inlined_call_operand.vmem [shape: f32[128,64], index: 4, kind: input, shape index: {}]   ;;  %s2694_s5 = inlined_call_operand.vmem [shape: f32[1,64], index: 5, kind: input, shape index: {}]   ;;  %s2695_s6 = inlined_call_operand.hbm [shape: f32[8,2,64], index: 6, kind: output, shape index: {0}]   ;;  %s2696_s7 = inlined_call_operand.hbm [shape: f32[2,32], index: 7, kind: output, shape index: {1}]   ;;  %s2697_s8 = inlined_call_operand.hbm [shape: f32[2,32], index: 8, kind: output, shape index: {2}]  }
   0x1   :  { %15 = vsyncpa [#allocation4], 0 }
   0x2   :  { %16 = vsyncpa [#allocation7], 0  ;;  %s2097_s27 = smov [#allocation2]   ;;  %s2003_s9 = scalar_lea.hbm %s2689_s0, 512 }
   0x3   :  { %s22_s28 = sshll.u32 %s2097_s27, 4  ;;  %p2004_p0 = scmp.ne.s32.totalorder %s2689_s0, %s2003_s9  ;;  %s23_s28 = int_to_ptr.vmem [resolvable:$true] %s22_s28 }
   0x4   :  { %p2007_p1 = scmp.lt.u32.totalorder %s2003_s9, %s2689_s0 }
   0x6   :  { %p2009_p2 = pnand %p2007_p1, %p2004_p0 }
   0x8   :  { %2012 = shalt.err (!%p2009_p2)
}
   0x9   :  { %s2013_s14 = scalar_lea.vmem %s23_s28, 512  ;;  %p2018_p4 = scmp.lt.s32.totalorder %s23_s28, %s23_s28 }
   0xa   :  { %p2014_p3 = scmp.ne.s32.totalorder %s23_s28, %s2013_s14  ;;  %p2019_p5 = scmp.lt.s32.totalorder %s2013_s14, %s2013_s14 }
   0xc   :  { %p2020_p6 = por %p2019_p5, %p2018_p4 }
   0xe   :  { %p2021_p7 = pnand %p2020_p6, %p2014_p3 }
  0x10   :  { %2024 = shalt.err (!%p2021_p7)
}
  0x11   :  { %s2098_s15 = smov 128   ;;  %s2099_s16 = smov 8  }
  0x12   :  { %28 = dma.hbm_to_vmem [thread:$0]  %s2689_s0, 512, %s23_s28, [#allocation3], %s2098_s15, %s2098_s15, %s2099_s16  }
  0x13   :  { %2091 = dma.done.wait [#allocation3], 512  }
  0x14   :  { %2092 = vsyncadd [#allocation3], 4294966784  ;;  %v2100_v0 = vmov 0.0|0.0   ;;  %vm2101_vm0 = vmmov 0   ;;  %v2102_v1 = vmov 0.0   ;;  %v156_v2 = vlaneseq  ;;  %v46_v3 = vld [vmem:[%s2690_s1] sm:$0xff] }
  0x15   :  { %1790 = vmatprep.subr.bf16.mxu1 %v2100_v0  ;;  %1587 = vmatprep.mubr.msk.f32.mxu1 %vm2101_vm0, %v2102_v1  ;;  %v47_v4 = vld [vmem:[%s2690_s1 + $0x8] sm:$0xff]  ;;  %v48_v5 = vld [vmem:[%s2690_s1 + $0x10] sm:$0xff]  ;;  %v49_v7 = vld [vmem:[%s2690_s1 + $0x18] sm:$0xff]  ;;  %vm2103_vm4 = vmmov 1   ;;  %vm167_vm6 = vcmask 523264   ;;  %v2104_v46 = vmov 0  }
  0x16   :  { %v1758_v6 = vpack.c.bf16 %v47_v4, %v46_v3  ;;  %v2191_v8 = vshrl.u32 %v156_v2, 7  ;;  %v160_v9 = vand.u32 127, %v156_v2  ;;  %v1762_v10 = vpack.c.bf16 %v49_v7, %v48_v5  ;;  %v50_v11 = vld [vmem:[%s2690_s1 + $0x20] sm:$0xff]  ;;  %v51_v12 = vld [vmem:[%s2690_s1 + $0x28] sm:$0xff]  ;;  %v149_v16 = vld [vmem:[%s2691_s2 + $0x10] sm:$0xff]  ;;  %1932 = vset.pattern.permute.xlu1 %v2104_v46  ;;  %1938 = vset.pattern.permute.xlu0 %v2104_v46  ;;  %s2107_s21 = smov 32  }
  0x17   :  { %v147_v13 = vld [vmem:[%s2691_s2] sm:$0xff]  ;;  %v148_v14 = vld [vmem:[%s2691_s2 + $0x8] sm:$0xff]  ;;  %v1766_v17 = vpack.c.bf16 %v51_v12, %v50_v11  ;;  %v150_v18 = vld [vmem:[%s2691_s2 + $0x18] sm:$0xff]  ;;  %v2105_v47 = vmov 7   ;;  %vm285_vm9 = vcmask 519426   ;;  %vm279_vm10 = vcmask 254976  }
  0x18   :  { %1759 = vmatprep.subr.bf16.mxu0 %v1758_v6  ;;  %v2205_v15 = vpack.c.bf16 %v148_v14, %v147_v13  ;;  %vm158_vm1 = vcmp.lt.s32.totalorder %v2191_v8, 2  ;;  %vm161_vm2 = vcmp.lt.s32.totalorder %v160_v9, 32  ;;  %v52_v19 = vld [vmem:[%s2690_s1 + $0x30] sm:$0xff]  ;;  %v53_v20 = vld [vmem:[%s2690_s1 + $0x38] sm:$0xff]  ;;  %v2221_v21 = vpack.c.bf16 %v150_v18, %v149_v16  ;;  %v151_v22 = vld [vmem:[%s2691_s2 + $0x20] sm:$0xff]  ;;  %s2109_s22 = smov 96  }
  0x19   :  { %1761 = vmatpush3.bf16.msra.mxu0 %v1758_v6  ;;  %v152_v23 = vld [vmem:[%s2691_s2 + $0x28] sm:$0xff]  ;;  %v42_v24 = vld [vmem:[#allocation2] sm:$0xff]  ;;  %vm162_vm3 = vmxor %vm158_vm1, %vm161_vm2  ;;  %v1770_v25 = vpack.c.bf16 %v53_v20, %v52_v19  ;;  %v266_v48 = vsel %vm158_vm1, 0, %v2105_v47  ;;  %vm287_vm11 = vcmask 261120  }
  0x1a   :  { %1763 = vmatprep.subr.bf16.mxu0 %v1762_v10  ;;  %1792 = vmatpush3.bf16.msra.mxu1 %v2205_v15  ;;  %v54_v26 = vld [vmem:[%s2690_s1 + $0x40] sm:$0xff]  ;;  %v55_v27 = vld [vmem:[%s2690_s1 + $0x48] sm:$0xff]  ;;  %v2239_v28 = vpack.c.bf16 %v152_v23, %v151_v22  ;;  %v153_v29 = vld [vmem:[%s2691_s2 + $0x30] sm:$0xff]  ;;  %v2108_v23 = vmov 6  }
  0x1b   :  { %1793 = vmatprep.subr.bf16.mxu1 %v2100_v0  ;;  %1565 = vmatprep.mubr.f32.mxu0 %v42_v24  ;;  %v154_v30 = vld [vmem:[%s2691_s2 + $0x38] sm:$0xff]  ;;  %vm163_vm5 = vmxor %vm162_vm3, %vm2103_vm4  ;;  %v1774_v31 = vpack.c.bf16 %v55_v27, %v54_v26  ;;  %v56_v32 = vld [vmem:[%s2690_s1 + $0x50] sm:$0xff]  ;;  %v394_v24 = vsel %vm158_vm1, 1, %v2108_v23 }
  0x1c   :  { %v57_v33 = vld [vmem:[%s2690_s1 + $0x58] sm:$0xff]  ;;  %v2255_v34 = vpack.c.bf16 %v154_v30, %v153_v29  ;;  %v2258_v35 = vsel %vm163_vm5, 1.0, %v2102_v1  ;;  %v58_v38 = vld [vmem:[%s2690_s1 + $0x60] sm:$0xff]  ;;  %v59_v39 = vld [vmem:[%s2690_s1 + $0x68] sm:$0xff] }
  0x1d   :  { %1765 = vmatpush3.bf16.msra.mxu0 %v1762_v10  ;;  %v1778_v36 = vpack.c.bf16 %v57_v33, %v56_v32  ;;  %v166_v37 = vmul.f32 0.0, %v2258_v35  ;;  %v1782_v40 = vpack.c.bf16 %v59_v39, %v58_v38  ;;  %v60_v41 = vld [vmem:[%s2690_s1 + $0x70] sm:$0xff]  ;;  %v61_v42 = vld [vmem:[%s2690_s1 + $0x78] sm:$0xff]  ;;  %v43_v44 = vld [vmem:[#allocation2 + $0x8] sm:$0xff] }
  0x1e   :  { %1767 = vmatprep.subr.bf16.mxu0 %v1766_v17  ;;  %1795 = vmatpush3.bf16.msra.mxu1 %v2221_v21  ;;  %v1786_v43 = vpack.c.bf16 %v61_v42, %v60_v41  ;;  %v2299_v45 = vld [vmem:[%s2692_s3] sm:$0xf]  ;;  %s2106_s3 = smov 64  }
  0x1f   :  { %1796 = vmatprep.subr.bf16.mxu1 %v2100_v0  ;;  %vm267_vm7 = vcmp.lt.s32.totalorder %v266_v48, %v2299_v45  ;;  %vm395_vm12 = vcmp.lt.s32.totalorder %v394_v24, %v2299_v45 }
  0x20   :  { %v268_v49 = vsel %vm267_vm7, 1, %v2104_v46  ;;  %v396_v29 = vsel %vm395_vm12, 1, %v2104_v46 }
  0x21   :  { %1769 = vmatpush3.bf16.msra.mxu0 %v1766_v17  ;;  %270 = vperm.xlu1 %1932, %v268_v49  }
  0x22   :  { %1771 = vmatprep.subr.bf16.mxu0 %v1770_v25  ;;  %1798 = vmatpush3.bf16.msra.mxu1 %v2239_v28 }
  0x23   :  { %1799 = vmatprep.subr.bf16.mxu1 %v2100_v0 }
  0x25   :  { %1773 = vmatpush3.bf16.msra.mxu0 %v1770_v25 }
  0x26   :  { %1775 = vmatprep.subr.bf16.mxu0 %v1774_v31  ;;  %1801 = vmatpush3.bf16.msra.mxu1 %v2255_v34 }
  0x27   :  { %1802 = vmatprep.subr.bf16.mxu1 %v2100_v0 }
  0x29   :  { %1777 = vmatpush3.bf16.msra.mxu0 %v1774_v31  ;;  %1588 = vmatmul.mubr.msk.f32.vlgmr.msra.gmra.mrb[0].mxu1 %vm167_vm6, %v166_v37 }
  0x2a   :  { %1779 = vmatprep.subr.bf16.mxu0 %v1778_v36  ;;  %1804 = vmatpush3.bf16.msra.mxu1 %v2205_v15 }
  0x2b   :  { %1606 = vmatprep.mubr.msk.f32.mxu1 %vm2101_vm0, %v2102_v1  ;;  %1805 = vmatprep.subr.bf16.mxu1 %v2100_v0 }
  0x2d   :  { %1781 = vmatpush3.bf16.msra.mxu0 %v1778_v36 }
  0x2e   :  { %1783 = vmatprep.subr.bf16.mxu0 %v1782_v40  ;;  %1807 = vmatpush3.bf16.msra.mxu1 %v2221_v21 }
  0x2f   :  { %1808 = vmatprep.subr.bf16.mxu1 %v2100_v0 }
  0x31   :  { %1785 = vmatpush3.bf16.msra.mxu0 %v1782_v40 }
  0x32   :  { %1787 = vmatprep.subr.bf16.mxu0 %v1786_v43  ;;  %1810 = vmatpush3.bf16.msra.mxu1 %v2239_v28 }
  0x33   :  { %1811 = vmatprep.subr.bf16.mxu1 %v2100_v0 }
  0x35   :  { %1789 = vmatpush3.bf16.msra.mxu0 %v1786_v43 }
  0x36   :  { %1838 = vmatprep.subr.bf16.mxu0 %v2100_v0  ;;  %1813 = vmatpush3.bf16.msra.mxu1 %v2255_v34 }
  0x37   :  { %1814 = vmatprep.subr.bf16.mxu1 %v2100_v0 }
  0x38   :  { %1566 = vmatmul.mubr.f32.vlgmr.msra.gmra.mrb[0].mxu0 %v43_v44 }
  0x39   :  { %1840 = vmatpush3.bf16.msra.mxu0 %v2205_v15 }
  0x3a   :  { %1841 = vmatprep.subr.bf16.mxu0 %v2100_v0 }
  0x3d   :  { %1843 = vmatpush3.bf16.msra.mxu0 %v2221_v21 }
  0x3e   :  { %1844 = vmatprep.subr.bf16.mxu0 %v2100_v0 }
  0x41   :  { %1846 = vmatpush3.bf16.msra.mxu0 %v2239_v28 }
  0x42   :  { %1847 = vmatprep.subr.bf16.mxu0 %v2100_v0 }
  0x45   :  { %1849 = vmatpush3.bf16.msra.mxu0 %v2255_v34 }
  0x46   :  { %1862 = vmatprep.subr.bf16.mxu0 %v2100_v0 }
  0xa0   :  { %v271_v4 = vpop.permute.xlu1 %270 }
  0xa1   :  { %vm272_vm8 = vcmp.eq.s32.totalorder %v271_v4, 1 }
  0xfc   :  { %v237_v50 = vpop.f32.mrb[0].mxu1 }
  0xfd   :  { %v1589_v51 = vpop.f32.mrb[1].mxu1 }
 0x10b   :  { %v2307_v52 = vpop.f32.mrb[0].mxu0 }
 0x10c   :  { %v128_v53 = vpop.f32.mrb[1].mxu0 }
 0x10d   :  { %v241_v54 = vadd.f32 %v237_v50, %v128_v53  ;;  %v2110_v50 = vmov 5  }
 0x10e   :  { %v533_v51 = vsel %vm158_vm1, 2, %v2110_v50 }
 0x10f   :  { %1939 = vtanh.f32 %v241_v54  ;;  %v1408_v56 = vmul.f32 -1.442695, %v241_v54  ;;  %vm534_vm14 = vcmp.lt.s32.totalorder %v533_v51, %v2299_v45 }
 0x111   :  { %1941 = vpow2.f32 %v1408_v56 }
 0x119   :  { %v1940_v55 = vpop.eup %1939 }
 0x11a   :  { %251 = vrot.lane.b32.xlu0 %v1940_v55, %s2106_s3 }
 0x11b   :  { %v1942_v57 = vpop.eup %1941 }
 0x11c   :  { %v245_v58 = vadd.f32 1.0, %v1942_v57  ;;  %v535_v57 = vsel %vm534_vm14, 1, %v2104_v46  ;;  %vm1260_vm14 = vcmask 785408  }
 0x11e   :  { %1943 = vrcp.f32 %v245_v58 }
 0x128   :  { %v1944_v59 = vpop.eup %1943 }
 0x129   :  { %v249_v62 = vmul.f32 0.0, %v1944_v59 }
 0x18c   :  { %v252_v60 = vpop.permute.xlu0 %251 }
 0x18d   :  { %v254_v61 = vmul.f32 %v1944_v59, %v252_v60 }
 0x18f   :  { %256 = vrot.lane.b32.xlu0 %v254_v61, %s2107_s21 }
 0x201   :  { %v257_v63 = vpop.permute.xlu0 %256 }
 0x202   :  { %v259_v2 = vadd.f32 %v257_v63, %v249_v62 }
 0x204   :  { %1945 = vtanh.f32 %v259_v2  ;;  %v274_v30 = vsel %vm272_vm8, %v259_v2, 0.0 }
 0x205   :  { %v375_v31 = vrot.slane %v274_v30, 4 }
 0x20e   :  { %v1946_v3 = vpop.eup %1945 }
 0x20f   :  { %262 = vrot.lane.b32.xlu1 %v1946_v3, %s2106_s3 }
 0x281   :  { %v263_v5 = vpop.permute.xlu1 %262 }
 0x282   :  { %v265_v6 = vmul.f32 %v1944_v59, %v263_v5 }
 0x284   :  { %v273_v7 = vsel %vm272_vm8, %v265_v6, 0.0 }
 0x285   :  { %281 = vrot.lane.b32.xlu1 %v273_v7, %s2106_s3  ;;  %276 = vrot.lane.b32.xlu0 %v273_v7, %s2107_s21 }
 0x2f7   :  { %v282_v9 = vpop.permute.xlu1 %281  ;;  %v277_v10 = vpop.permute.xlu0 %276 }
 0x2f8   :  { %286 = vst.msk [vmem:[#allocation5 + $0xc] sm:$0xc] %vm285_vm9, %v282_v9  ;;  %v288_v11 = vsel %vm287_vm11, %v277_v10, %v282_v9 }
 0x2f9   :  { %280 = vst.msk [vmem:[#allocation5] sm:$0x3] %vm279_vm10, %v277_v10  ;;  %v289_v12 = vmul.f32 %v2258_v35, %v288_v11 }
 0x2fb   :  { %1607 = vmatmul.mubr.msk.f32.vlgmr.msra.gmra.mrb[2].mxu1 %vm167_vm6, %v289_v12 }
 0x2fc   :  { %1816 = vmatpush3.bf16.msra.mxu1 %v2205_v15  ;;  %1625 = vmatprep.mubr.msk.f32.mxu1 %vm2101_vm0, %v2102_v1 }
 0x2fd   :  { %1817 = vmatprep.subr.bf16.mxu1 %v2100_v0 }
 0x300   :  { %1819 = vmatpush3.bf16.msra.mxu1 %v2221_v21 }
 0x301   :  { %1820 = vmatprep.subr.bf16.mxu1 %v2100_v0 }
 0x304   :  { %1822 = vmatpush3.bf16.msra.mxu1 %v2239_v28 }
 0x305   :  { %1823 = vmatprep.subr.bf16.mxu1 %v2100_v0 }
 0x308   :  { %1825 = vmatpush3.bf16.msra.mxu1 %v2255_v34 }
 0x309   :  { %1826 = vmatprep.subr.bf16.mxu1 %v2100_v0 }
 0x3ce   :  { %v359_v13 = vpop.f32.mrb[2].mxu1 }
 0x3cf   :  { %v364_v14 = vrot.slane %v359_v13, 4  ;;  %v1608_v16 = vpop.f32.mrb[3].mxu1 }
 0x3d1   :  { %v366_v17 = vadd.f32 %v364_v14, %v128_v53 }
 0x3d3   :  { %1947 = vtanh.f32 %v366_v17  ;;  %v1410_v19 = vmul.f32 -1.442695, %v366_v17 }
 0x3d5   :  { %1949 = vpow2.f32 %v1410_v19 }
 0x3dd   :  { %v1948_v18 = vpop.eup %1947 }
 0x3de   :  { %379 = vrot.lane.b32.xlu0 %v1948_v18, %s2106_s3 }
 0x3df   :  { %v1950_v20 = vpop.eup %1949 }
 0x3e0   :  { %v370_v22 = vadd.f32 1.0, %v1950_v20 }
 0x3e2   :  { %1951 = vrcp.f32 %v370_v22 }
 0x3ec   :  { %v1952_v25 = vpop.eup %1951 }
 0x3ed   :  { %v377_v32 = vmul.f32 %v1952_v25, %v375_v31 }
 0x450   :  { %v380_v26 = vpop.permute.xlu0 %379 }
 0x451   :  { %v382_v27 = vmul.f32 %v1952_v25, %v380_v26 }
 0x453   :  { %384 = vrot.lane.b32.xlu1 %v382_v27, %s2107_s21 }
 0x457   :  { %398 = vperm.xlu1 %1932, %v396_v29  }
 0x4c5   :  { %v385_v33 = vpop.permute.xlu1 %384 }
 0x4c6   :  { %v387_v36 = vadd.f32 %v385_v33, %v377_v32  ;;  %v2111_v32 = vmov 4  }
 0x4c7   :  { %v670_v33 = vsel %vm158_vm1, 3, %v2111_v32 }
 0x4c8   :  { %1953 = vtanh.f32 %v387_v36  ;;  %v408_v41 = vrot.slane %v387_v36, 4  ;;  %vm671_vm2 = vcmp.lt.s32.totalorder %v670_v33, %v2299_v45 }
 0x4d2   :  { %v1954_v37 = vpop.eup %1953 }
 0x4d3   :  { %390 = vrot.lane.b32.xlu0 %v1954_v37, %s2106_s3 }
 0x4d6   :  { %v399_v42 = vpop.permute.xlu1 %398 }
 0x4d7   :  { %vm400_vm13 = vcmp.eq.s32.totalorder %v399_v42, 1 }
 0x545   :  { %v391_v38 = vpop.permute.xlu0 %390 }
 0x546   :  { %v393_v39 = vmul.f32 %v1952_v25, %v391_v38 }
 0x548   :  { %v402_v40 = vrot.slane %v393_v39, 4 }
 0x54a   :  { %403 = vrot.lane.b32.xlu0 %v402_v40, %s2107_s21 }
 0x54e   :  { %409 = vrot.lane.b32.xlu0 %v408_v41, %s2109_s22 }
 0x5bc   :  { %v404_v43 = vpop.permute.xlu0 %403 }
 0x5bd   :  { %v406_v44 = vsel %vm400_vm13, %v404_v43, %v277_v10  ;;  %v2342_v47 = vsel %vm400_vm13, %v404_v43, 0.0 }
 0x5be   :  { %426 = vrot.lane.b32.xlu1 %v406_v44, %s2107_s21  ;;  %418 = vst.msk [vmem:[#allocation5 + $0x2] sm:$0x3] %vm279_vm10, %v2342_v47 }
 0x5c0   :  { %v410_v54 = vpop.permute.xlu0 %409 }
 0x5c2   :  { %412 = vrot.lane.b32.xlu1 %v274_v30, %s2109_s22 }
 0x630   :  { %v427_v48 = vpop.permute.xlu1 %426 }
 0x631   :  { %v429_v49 = vsel %vm287_vm11, %v406_v44, %v427_v48  ;;  %v44_v48 = vld [vmem:[#allocation2 + $0x10] sm:$0xff] }
 0x632   :  { %v430_v53 = vmul.f32 %v2258_v35, %v429_v49  ;;  %v45_v49 = vld [vmem:[#allocation2 + $0x18] sm:$0xff]  ;;  %1568 = vmatprep.mubr.f32.mxu0 %v44_v48  ;;  %v2113_v48 = vmov 2  }
 0x633   :  { %1569 = vmatmul.mubr.f32.gmra.mrb[2].mxu0 %v45_v49 }
 0x634   :  { %1626 = vmatmul.mubr.msk.f32.vlgmr.msra.gmra.mrb[4].mxu1 %vm167_vm6, %v430_v53  ;;  %v413_v55 = vpop.permute.xlu1 %412  ;;  %1663 = vmatprep.mubr.msk.f32.mxu0 %vm2101_vm0, %v2102_v1 }
 0x635   :  { %v415_v56 = vsel %vm400_vm13, %v410_v54, %v413_v55  ;;  %1828 = vmatpush3.bf16.msra.mxu1 %v2205_v15  ;;  %1644 = vmatprep.mubr.msk.f32.mxu1 %vm2101_vm0, %v2102_v1 }
 0x636   :  { %513 = vrot.lane.b32.xlu1 %v415_v56, %s2107_s21  ;;  %1829 = vmatprep.subr.bf16.mxu1 %v2100_v0 }
 0x639   :  { %1831 = vmatpush3.bf16.msra.mxu1 %v2221_v21 }
 0x63a   :  { %537 = vperm.xlu1 %1932, %v535_v57   ;;  %1832 = vmatprep.subr.bf16.mxu1 %v2100_v0 }
 0x63d   :  { %1834 = vmatpush3.bf16.msra.mxu1 %v2239_v28 }
 0x63e   :  { %540 = vrot.lane.b32.xlu1 %v406_v44, %s2109_s22  ;;  %1835 = vmatprep.subr.bf16.mxu1 %v2100_v0 }
 0x641   :  { %1837 = vmatpush3.bf16.msra.mxu1 %v2255_v34 }
 0x642   :  { %1850 = vmatprep.subr.bf16.mxu1 %v2100_v0 }
 0x6a8   :  { %v514_v6 = vpop.permute.xlu1 %513 }
 0x6b9   :  { %v2372_v12 = vpop.permute.xlu1 %537 }
 0x6ba   :  { %vm539_vm15 = vcmp.eq.s32.totalorder %v2372_v12, 1 }
 0x6bd   :  { %v541_v16 = vpop.permute.xlu1 %540 }
 0x707   :  { %v500_v58 = vpop.f32.mrb[4].mxu1 }
 0x708   :  { %v504_v59 = vadd.f32 %v2307_v52, %v500_v58  ;;  %v1627_v60 = vpop.f32.mrb[5].mxu1 }
 0x70a   :  { %1955 = vtanh.f32 %v504_v59  ;;  %v1412_v62 = vmul.f32 -1.442695, %v504_v59 }
 0x70c   :  { %1957 = vpow2.f32 %v1412_v62 }
 0x714   :  { %v1956_v61 = vpop.eup %1955 }
 0x715   :  { %518 = vrot.lane.b32.xlu0 %v1956_v61, %s2106_s3  ;;  %v2112_v61 = vmov 3  }
 0x716   :  { %v1958_v63 = vpop.eup %1957  ;;  %v809_v62 = vsel %vm158_vm1, 4, %v2112_v61 }
 0x717   :  { %v508_v2 = vadd.f32 1.0, %v1958_v63  ;;  %vm810_vm4 = vcmp.lt.s32.totalorder %v809_v62, %v2299_v45 }
 0x719   :  { %1959 = vrcp.f32 %v508_v2 }
 0x723   :  { %v1960_v3 = vpop.eup %1959 }
 0x724   :  { %v516_v7 = vmul.f32 %v1960_v3, %v514_v6 }
 0x787   :  { %v519_v4 = vpop.permute.xlu0 %518 }
 0x788   :  { %v521_v5 = vmul.f32 %v1960_v3, %v519_v4 }
 0x78a   :  { %523 = vrot.lane.b32.xlu0 %v521_v5, %s2107_s21  ;;  %v811_v5 = vsel %vm810_vm4, 1, %v2104_v46 }
 0x7fc   :  { %v524_v9 = vpop.permute.xlu0 %523 }
 0x7fd   :  { %v526_v10 = vadd.f32 %v524_v9, %v516_v7 }
 0x7ff   :  { %1961 = vtanh.f32 %v526_v10  ;;  %v544_v39 = vsel %vm539_vm15, %v526_v10, %v514_v6  ;;  %v2432_v6 = vpop.f32.mrb[2].mxu0 }
 0x800   :  { %v651_v40 = vrot.slane %v544_v39, 4  ;;  %v138_v7 = vpop.f32.mrb[3].mxu0 }
 0x809   :  { %v1962_v11 = vpop.eup %1961 }
 0x80a   :  { %529 = vrot.lane.b32.xlu0 %v1962_v11, %s2106_s3 }
 0x87c   :  { %v530_v13 = vpop.permute.xlu0 %529 }
 0x87d   :  { %v2374_v14 = vmul.f32 %v1960_v3, %v530_v13 }
 0x87f   :  { %v543_v17 = vsel %vm539_vm15, %v2374_v14, %v541_v16 }
 0x880   :  { %561 = vrot.lane.b32.xlu1 %v543_v17, %s2106_s3  ;;  %558 = vrot.lane.b32.xlu0 %v543_v17, %s2107_s21 }
 0x8f2   :  { %v562_v18 = vpop.permute.xlu1 %561  ;;  %v559_v19 = vpop.permute.xlu0 %558 }
 0x8f3   :  { %v564_v20 = vsel %vm287_vm11, %v559_v19, %v562_v18 }
 0x8f4   :  { %v565_v22 = vmul.f32 %v2258_v35, %v564_v20 }
 0x8f6   :  { %1645 = vmatmul.mubr.msk.f32.vlgmr.msra.gmra.mrb[6].mxu1 %vm167_vm6, %v565_v22 }
 0x8f7   :  { %1852 = vmatpush3.bf16.msra.mxu1 %v2205_v15  ;;  %1682 = vmatprep.mubr.msk.f32.mxu1 %vm2101_vm0, %v2102_v1 }
 0x8f8   :  { %1853 = vmatprep.subr.bf16.mxu1 %v2100_v0 }
 0x8fb   :  { %1855 = vmatpush3.bf16.msra.mxu1 %v2221_v21 }
 0x8fc   :  { %1856 = vmatprep.subr.bf16.mxu1 %v2100_v0 }
 0x8ff   :  { %1858 = vmatpush3.bf16.msra.mxu1 %v2239_v28 }
 0x900   :  { %1859 = vmatprep.subr.bf16.mxu1 %v2100_v0 }
 0x903   :  { %1861 = vmatpush3.bf16.msra.mxu1 %v2255_v34 }
 0x904   :  { %1874 = vmatprep.subr.bf16.mxu1 %v2100_v0 }
 0x9c9   :  { %v635_v23 = vpop.f32.mrb[6].mxu1 }
 0x9ca   :  { %v640_v24 = vrot.slane %v635_v23, 4  ;;  %v1646_v25 = vpop.f32.mrb[7].mxu1 }
 0x9cc   :  { %v642_v26 = vadd.f32 %v2307_v52, %v640_v24  ;;  %v672_v52 = vsel %vm671_vm2, 1, %v2104_v46 }
 0x9ce   :  { %1963 = vtanh.f32 %v642_v26  ;;  %v1414_v29 = vmul.f32 -1.442695, %v642_v26 }
 0x9d0   :  { %1965 = vpow2.f32 %v1414_v29 }
 0x9d8   :  { %v1964_v27 = vpop.eup %1963 }
 0x9d9   :  { %655 = vrot.lane.b32.xlu0 %v1964_v27, %s2106_s3 }
 0x9da   :  { %v1966_v30 = vpop.eup %1965 }
 0x9db   :  { %v646_v31 = vadd.f32 1.0, %v1966_v30 }
 0x9dd   :  { %1967 = vrcp.f32 %v646_v31 }
 0x9e7   :  { %v1968_v36 = vpop.eup %1967 }
 0x9e8   :  { %v653_v41 = vmul.f32 %v1968_v36, %v651_v40 }
 0xa4b   :  { %v656_v37 = vpop.permute.xlu0 %655 }
 0xa4c   :  { %v658_v38 = vmul.f32 %v1968_v36, %v656_v37 }
 0xa4e   :  { %660 = vrot.lane.b32.xlu1 %v658_v38, %s2107_s21 }
 0xa52   :  { %674 = vperm.xlu1 %1932, %v672_v52  }
 0xac0   :  { %v661_v42 = vpop.permute.xlu1 %660 }
 0xac1   :  { %v663_v43 = vadd.f32 %v661_v42, %v653_v41 }
 0xac3   :  { %1969 = vtanh.f32 %v663_v43  ;;  %v684_v54 = vrot.slane %v663_v43, 4 }
 0xacd   :  { %v1970_v44 = vpop.eup %1969 }
 0xace   :  { %666 = vrot.lane.b32.xlu0 %v1970_v44, %s2106_s3 }
 0xad1   :  { %v675_v55 = vpop.permute.xlu1 %674 }
 0xad2   :  { %vm676_vm3 = vcmp.eq.s32.totalorder %v675_v55, 1 }
 0xb40   :  { %v667_v50 = vpop.permute.xlu0 %666 }
 0xb41   :  { %v669_v51 = vmul.f32 %v1968_v36, %v667_v50 }
 0xb43   :  { %v678_v53 = vrot.slane %v669_v51, 4 }
 0xb45   :  { %679 = vrot.lane.b32.xlu0 %v678_v53, %s2107_s21 }
 0xb49   :  { %685 = vrot.lane.b32.xlu0 %v684_v54, %s2109_s22 }
 0xbb7   :  { %v680_v56 = vpop.permute.xlu0 %679 }
 0xbb8   :  { %v682_v57 = vsel %vm676_vm3, %v680_v56, %v559_v19  ;;  %v2411_v58 = vsel %vm676_vm3, %v680_v56, 0.0 }
 0xbb9   :  { %702 = vrot.lane.b32.xlu1 %v682_v57, %s2107_s21  ;;  %694 = vst.msk [vmem:[#allocation5 + $0x6] sm:$0x3] %vm279_vm10, %v2411_v58 }
 0xbbb   :  { %v686_v2 = vpop.permute.xlu0 %685 }
 0xbbd   :  { %688 = vrot.lane.b32.xlu1 %v544_v39, %s2109_s22 }
 0xc2b   :  { %v703_v59 = vpop.permute.xlu1 %702 }
 0xc2c   :  { %v705_v60 = vsel %vm287_vm11, %v682_v57, %v703_v59 }
 0xc2d   :  { %v706_v63 = vmul.f32 %v2258_v35, %v705_v60 }
 0xc2f   :  { %1664 = vmatmul.mubr.msk.f32.vlgmr.msra.gmra.mrb[4].mxu0 %vm167_vm6, %v706_v63  ;;  %v689_v3 = vpop.permute.xlu1 %688 }
 0xc30   :  { %v691_v4 = vsel %vm676_vm3, %v686_v2, %v689_v3  ;;  %1864 = vmatpush3.bf16.msra.mxu0 %v2205_v15  ;;  %1701 = vmatprep.mubr.msk.f32.mxu0 %vm2101_vm0, %v2102_v1 }
 0xc31   :  { %789 = vrot.lane.b32.xlu1 %v691_v4, %s2107_s21  ;;  %1865 = vmatprep.subr.bf16.mxu0 %v2100_v0 }
 0xc34   :  { %1867 = vmatpush3.bf16.msra.mxu0 %v2221_v21 }
 0xc35   :  { %813 = vperm.xlu1 %1932, %v811_v5   ;;  %1868 = vmatprep.subr.bf16.mxu0 %v2100_v0 }
 0xc38   :  { %1870 = vmatpush3.bf16.msra.mxu0 %v2239_v28 }
 0xc39   :  { %816 = vrot.lane.b32.xlu1 %v682_v57, %s2109_s22  ;;  %1871 = vmatprep.subr.bf16.mxu0 %v2100_v0 }
 0xc3c   :  { %1873 = vmatpush3.bf16.msra.mxu0 %v2255_v34 }
 0xc3d   :  { %1886 = vmatprep.subr.bf16.mxu0 %v2100_v0 }
 0xca3   :  { %v790_v23 = vpop.permute.xlu1 %789 }
 0xcb4   :  { %v2442_v29 = vpop.permute.xlu1 %813 }
 0xcb5   :  { %vm815_vm5 = vcmp.eq.s32.totalorder %v2442_v29, 1  ;;  %v1263_v29 = vld [vmem:[%s2693_s4 + $0x8] sm:$0xff] }
 0xcb8   :  { %v817_v32 = vpop.permute.xlu1 %816 }
 0xd02   :  { %v776_v9 = vpop.f32.mrb[4].mxu0 }
 0xd03   :  { %v780_v10 = vadd.f32 %v776_v9, %v138_v7  ;;  %v1665_v11 = vpop.f32.mrb[5].mxu0  ;;  %v2114_v9 = vmov 1  }
 0xd05   :  { %1971 = vtanh.f32 %v780_v10  ;;  %v1416_v16 = vmul.f32 -1.442695, %v780_v10  ;;  %v1081_v10 = vsel %vm158_vm1, 6, %v2114_v9 }
 0xd06   :  { %vm1082_vm12 = vcmp.lt.s32.totalorder %v1081_v10, %v2299_v45 }
 0xd07   :  { %1973 = vpow2.f32 %v1416_v16 }
 0xd0f   :  { %v1972_v13 = vpop.eup %1971 }
 0xd10   :  { %794 = vrot.lane.b32.xlu0 %v1972_v13, %s2106_s3 }
 0xd11   :  { %v1974_v17 = vpop.eup %1973 }
 0xd12   :  { %v784_v18 = vadd.f32 1.0, %v1974_v17 }
 0xd14   :  { %1975 = vrcp.f32 %v784_v18  ;;  %v1083_v18 = vsel %vm1082_vm12, 1, %v2104_v46 }
 0xd1e   :  { %v1976_v19 = vpop.eup %1975 }
 0xd1f   :  { %v792_v24 = vmul.f32 %v1976_v19, %v790_v23 }
 0xd82   :  { %v795_v20 = vpop.permute.xlu0 %794 }
 0xd83   :  { %v797_v22 = vmul.f32 %v1976_v19, %v795_v20 }
 0xd85   :  { %799 = vrot.lane.b32.xlu0 %v797_v22, %s2107_s21 }
 0xdf7   :  { %v800_v25 = vpop.permute.xlu0 %799 }
 0xdf8   :  { %v802_v26 = vadd.f32 %v800_v25, %v792_v24 }
 0xdfa   :  { %1977 = vtanh.f32 %v802_v26  ;;  %v820_v53 = vsel %vm815_vm5, %v802_v26, %v790_v23 }
 0xdfb   :  { %v925_v54 = vrot.slane %v820_v53, 4 }
 0xe04   :  { %v1978_v27 = vpop.eup %1977 }
 0xe05   :  { %805 = vrot.lane.b32.xlu0 %v1978_v27, %s2106_s3 }
 0xe77   :  { %v806_v30 = vpop.permute.xlu0 %805 }
 0xe78   :  { %v2444_v31 = vmul.f32 %v1976_v19, %v806_v30 }
 0xe7a   :  { %v819_v33 = vsel %vm815_vm5, %v2444_v31, %v817_v32 }
 0xe7b   :  { %835 = vrot.lane.b32.xlu1 %v819_v33, %s2106_s3  ;;  %832 = vrot.lane.b32.xlu0 %v819_v33, %s2107_s21 }
 0xeed   :  { %v836_v36 = vpop.permute.xlu1 %835  ;;  %v833_v37 = vpop.permute.xlu0 %832 }
 0xeee   :  { %v838_v38 = vsel %vm287_vm11, %v833_v37, %v836_v36 }
 0xeef   :  { %v839_v52 = vmul.f32 %v2258_v35, %v838_v38 }
 0xef1   :  { %1683 = vmatmul.mubr.msk.f32.vlgmr.msra.gmra.mrb[8].mxu1 %vm167_vm6, %v839_v52 }
 0xef2   :  { %1876 = vmatpush3.bf16.msra.mxu1 %v2205_v15  ;;  %1720 = vmatprep.mubr.msk.f32.mxu1 %vm2101_vm0, %v2102_v1 }
 0xef3   :  { %1877 = vmatprep.subr.bf16.mxu1 %v2100_v0 }
 0xef6   :  { %1879 = vmatpush3.bf16.msra.mxu1 %v2221_v21 }
 0xef7   :  { %1880 = vmatprep.subr.bf16.mxu1 %v2100_v0 }
 0xefa   :  { %1882 = vmatpush3.bf16.msra.mxu1 %v2239_v28  ;;  %v944_v28 = vsel %vm158_vm1, 5, %v2113_v48 }
 0xefb   :  { %1883 = vmatprep.subr.bf16.mxu1 %v2100_v0  ;;  %vm945_vm7 = vcmp.lt.s32.totalorder %v944_v28, %v2299_v45 }
 0xefc   :  { %v946_v51 = vsel %vm945_vm7, 1, %v2104_v46 }
 0xefe   :  { %1885 = vmatpush3.bf16.msra.mxu1 %v2255_v34 }
 0xfc4   :  { %v909_v39 = vpop.f32.mrb[8].mxu1 }
 0xfc5   :  { %v914_v40 = vrot.slane %v909_v39, 4  ;;  %v1684_v41 = vpop.f32.mrb[9].mxu1 }
 0xfc7   :  { %v916_v42 = vadd.f32 %v914_v40, %v138_v7 }
 0xfc9   :  { %1979 = vtanh.f32 %v916_v42  ;;  %v1418_v43 = vmul.f32 -1.442695, %v916_v42 }
 0xfcb   :  { %1981 = vpow2.f32 %v1418_v43 }
 0xfd3   :  { %v1980_v15 = vpop.eup %1979 }
 0xfd4   :  { %929 = vrot.lane.b32.xlu0 %v1980_v15, %s2106_s3 }
 0xfd5   :  { %v1982_v44 = vpop.eup %1981 }
 0xfd6   :  { %v920_v21 = vadd.f32 1.0, %v1982_v44 }
 0xfd8   :  { %1983 = vrcp.f32 %v920_v21 }
 0xfe2   :  { %v1984_v49 = vpop.eup %1983 }
 0xfe3   :  { %v927_v55 = vmul.f32 %v1984_v49, %v925_v54 }
0x1046   :  { %v930_v50 = vpop.permute.xlu0 %929 }
0x1047   :  { %v932_v34 = vmul.f32 %v1984_v49, %v930_v50 }
0x1049   :  { %934 = vrot.lane.b32.xlu1 %v932_v34, %s2107_s21 }
0x104d   :  { %948 = vperm.xlu1 %1932, %v946_v51  }
0x10bb   :  { %v935_v56 = vpop.permute.xlu1 %934 }
0x10bc   :  { %v937_v57 = vadd.f32 %v935_v56, %v927_v55 }
0x10be   :  { %1985 = vtanh.f32 %v937_v57  ;;  %v958_v63 = vrot.slane %v937_v57, 4 }
0x10c8   :  { %v1986_v59 = vpop.eup %1985 }
0x10c9   :  { %940 = vrot.lane.b32.xlu0 %v1986_v59, %s2106_s3 }
0x10cc   :  { %v2475_v2 = vpop.permute.xlu1 %948 }
0x10cd   :  { %vm950_vm8 = vcmp.eq.s32.totalorder %v2475_v2, 1 }
0x113b   :  { %v941_v60 = vpop.permute.xlu0 %940 }
0x113c   :  { %v943_v61 = vmul.f32 %v1984_v49, %v941_v60 }
0x113e   :  { %v952_v62 = vrot.slane %v943_v61, 4 }
0x1140   :  { %953 = vrot.lane.b32.xlu0 %v952_v62, %s2107_s21 }
0x1144   :  { %959 = vrot.lane.b32.xlu0 %v958_v63, %s2109_s22 }
0x11b2   :  { %v2478_v3 = vpop.permute.xlu0 %953 }
0x11b3   :  { %v956_v4 = vsel %vm950_vm8, %v2478_v3, %v833_v37 }
0x11b4   :  { %974 = vrot.lane.b32.xlu1 %v956_v4, %s2107_s21 }
0x11b6   :  { %v960_v13 = vpop.permute.xlu0 %959 }
0x11b8   :  { %962 = vrot.lane.b32.xlu1 %v820_v53, %s2109_s22 }
0x1226   :  { %v975_v5 = vpop.permute.xlu1 %974 }
0x1227   :  { %v977_v7 = vsel %vm287_vm11, %v956_v4, %v975_v5 }
0x1228   :  { %v978_v11 = vmul.f32 %v2258_v35, %v977_v7 }
0x122a   :  { %1702 = vmatmul.mubr.msk.f32.vlgmr.msra.gmra.mrb[6].mxu0 %vm167_vm6, %v978_v11  ;;  %v963_v16 = vpop.permute.xlu1 %962 }
0x122b   :  { %v965_v17 = vsel %vm950_vm8, %v960_v13, %v963_v16  ;;  %1755 = vmatprep.mubr.msk.f32.mxu0 %vm2101_vm0, %v2102_v1 }
0x122c   :  { %1061 = vrot.lane.b32.xlu1 %v965_v17, %s2107_s21  ;;  %v2541_v17 = vsel %vm539_vm15, %v2374_v14, 0.0  ;;  %v1262_v14 = vld [vmem:[%s2693_s4] sm:$0xff] }
0x122d   :  { %v1887_v2 = vpack.c.bf16 %v1263_v29, %v1262_v14 }
0x122f   :  { %1888 = vmatpush3.bf16.msra.mxu0 %v1887_v2 }
0x1230   :  { %1085 = vperm.xlu1 %1932, %v1083_v18   ;;  %v2549_v18 = vsel %vm815_vm5, %v2444_v31, 0.0  ;;  %v1264_v31 = vld [vmem:[%s2693_s4 + $0x10] sm:$0xff]  ;;  %1889 = vmatprep.subr.bf16.mxu0 %v2100_v0 }
0x1234   :  { %1088 = vrot.lane.b32.xlu1 %v956_v4, %s2109_s22 }
0x129e   :  { %v1062_v32 = vpop.permute.xlu1 %1061 }
0x12af   :  { %v2502_v52 = vpop.permute.xlu1 %1085 }
0x12b0   :  { %vm1087_vm0 = vcmp.eq.s32.totalorder %v2502_v52, 1 }
0x12b3   :  { %v1089_v41 = vpop.permute.xlu1 %1088 }
0x12fd   :  { %v1048_v19 = vpop.f32.mrb[6].mxu0 }
0x12fe   :  { %v1052_v20 = vadd.f32 %v2432_v6, %v1048_v19  ;;  %v1703_v22 = vpop.f32.mrb[7].mxu0 }
0x12ff   :  { %v1267_v22 = vld [vmem:[%s2693_s4 + $0x28] sm:$0xff] }
0x1300   :  { %1987 = vtanh.f32 %v1052_v20  ;;  %v1420_v24 = vmul.f32 -1.442695, %v1052_v20  ;;  %v1266_v20 = vld [vmem:[%s2693_s4 + $0x20] sm:$0xff] }
0x1302   :  { %1989 = vpow2.f32 %v1420_v24  ;;  %v1268_v24 = vld [vmem:[%s2693_s4 + $0x30] sm:$0xff] }
0x130a   :  { %v1988_v23 = vpop.eup %1987 }
0x130b   :  { %1066 = vrot.lane.b32.xlu0 %v1988_v23, %s2106_s3  ;;  %v1893_v23 = vpack.c.bf16 %v1267_v22, %v1266_v20 }
0x130c   :  { %v1990_v25 = vpop.eup %1989 }
0x130d   :  { %v1056_v26 = vadd.f32 1.0, %v1990_v25  ;;  %v1269_v25 = vld [vmem:[%s2693_s4 + $0x38] sm:$0xff] }
0x130f   :  { %1991 = vrcp.f32 %v1056_v26  ;;  %v1896_v26 = vpack.c.bf16 %v1269_v25, %v1268_v24 }
0x1319   :  { %v1992_v1 = vpop.eup %1991 }
0x131a   :  { %v1064_v33 = vmul.f32 %v1992_v1, %v1062_v32 }
0x137d   :  { %v1067_v27 = vpop.permute.xlu0 %1066 }
0x137e   :  { %v1069_v30 = vmul.f32 %v1992_v1, %v1067_v27  ;;  %v1271_v27 = vld [vmem:[%s2693_s4 + $0x48] sm:$0xff] }
0x1380   :  { %1071 = vrot.lane.b32.xlu0 %v1069_v30, %s2107_s21 }
0x13f2   :  { %v1072_v36 = vpop.permute.xlu0 %1071 }
0x13f3   :  { %v1074_v37 = vadd.f32 %v1072_v36, %v1064_v33  ;;  %v1273_v33 = vld [vmem:[%s2693_s4 + $0x58] sm:$0xff] }
0x13f5   :  { %1993 = vtanh.f32 %v1074_v37  ;;  %v1092_v59 = vsel %vm1087_vm0, %v1074_v37, %v1062_v32  ;;  %v1272_v32 = vld [vmem:[%s2693_s4 + $0x50] sm:$0xff]  ;;  %v1274_v37 = vld [vmem:[%s2693_s4 + $0x60] sm:$0xff] }
0x13f6   :  { %v1197_v60 = vrot.slane %v1092_v59, 4  ;;  %v1902_v36 = vpack.c.bf16 %v1273_v33, %v1272_v32 }
0x13ff   :  { %v1994_v38 = vpop.eup %1993 }
0x1400   :  { %1077 = vrot.lane.b32.xlu0 %v1994_v38, %s2106_s3  ;;  %v1275_v38 = vld [vmem:[%s2693_s4 + $0x68] sm:$0xff] }
0x1401   :  { %v1905_v52 = vpack.c.bf16 %v1275_v38, %v1274_v37 }
0x1472   :  { %v1078_v39 = vpop.permute.xlu0 %1077 }
0x1473   :  { %v1080_v40 = vmul.f32 %v1992_v1, %v1078_v39  ;;  %v1270_v1 = vld [vmem:[%s2693_s4 + $0x40] sm:$0xff]  ;;  %v1276_v39 = vld [vmem:[%s2693_s4 + $0x70] sm:$0xff] }
0x1474   :  { %v1899_v30 = vpack.c.bf16 %v1271_v27, %v1270_v1 }
0x1475   :  { %v1091_v42 = vsel %vm1087_vm0, %v1080_v40, %v1089_v41  ;;  %v1093_v12 = vsel %vm1087_vm0, %v1080_v40, 0.0  ;;  %v1277_v40 = vld [vmem:[%s2693_s4 + $0x78] sm:$0xff] }
0x1476   :  { %1107 = vrot.lane.b32.xlu1 %v1091_v42, %s2106_s3  ;;  %1104 = vrot.lane.b32.xlu0 %v1091_v42, %s2107_s21  ;;  %v1908_v41 = vpack.c.bf16 %v1277_v40, %v1276_v39 }
0x14e8   :  { %v1108_v15 = vpop.permute.xlu1 %1107  ;;  %v2509_v43 = vpop.permute.xlu0 %1104 }
0x14e9   :  { %v1110_v44 = vsel %vm287_vm11, %v2509_v43, %v1108_v15 }
0x14ea   :  { %v1111_v21 = vmul.f32 %v2258_v35, %v1110_v44  ;;  %v1216_v35 = vsel %vm158_vm1, 7, %v2104_v46 }
0x14eb   :  { %vm1217_vm13 = vcmp.lt.s32.totalorder %v1216_v35, %v2299_v45 }
0x14ec   :  { %1721 = vmatmul.mubr.msk.f32.vlgmr.msra.gmra.mrb[10].mxu1 %vm167_vm6, %v1111_v21 }
0x15bf   :  { %v1181_v48 = vpop.f32.mrb[10].mxu1 }
0x15c0   :  { %v1186_v28 = vrot.slane %v1181_v48, 4  ;;  %v1722_v49 = vpop.f32.mrb[11].mxu1 }
0x15c2   :  { %v1188_v50 = vadd.f32 %v2432_v6, %v1186_v28  ;;  %v1218_v6 = vsel %vm1217_vm13, 1, %v2104_v46 }
0x15c4   :  { %1995 = vtanh.f32 %v1188_v50  ;;  %v1422_v51 = vmul.f32 -1.442695, %v1188_v50 }
0x15c6   :  { %1997 = vpow2.f32 %v1422_v51 }
0x15ce   :  { %v1996_v34 = vpop.eup %1995 }
0x15cf   :  { %1201 = vrot.lane.b32.xlu0 %v1996_v34, %s2106_s3 }
0x15d0   :  { %v1998_v53 = vpop.eup %1997 }
0x15d1   :  { %v1192_v54 = vadd.f32 1.0, %v1998_v53 }
0x15d3   :  { %1999 = vrcp.f32 %v1192_v54 }
0x15dd   :  { %v2000_v55 = vpop.eup %1999 }
0x15de   :  { %v1199_v61 = vmul.f32 %v2000_v55, %v1197_v60 }
0x1641   :  { %v1202_v56 = vpop.permute.xlu0 %1201 }
0x1642   :  { %v1204_v57 = vmul.f32 %v2000_v55, %v1202_v56 }
0x1644   :  { %1206 = vrot.lane.b32.xlu1 %v1204_v57, %s2107_s21 }
0x1648   :  { %1220 = vperm.xlu1 %1932, %v1218_v6  }
0x16b6   :  { %v1207_v62 = vpop.permute.xlu1 %1206 }
0x16b7   :  { %v1209_v63 = vadd.f32 %v1207_v62, %v1199_v61 }
0x16b9   :  { %2001 = vtanh.f32 %v1209_v63  ;;  %v1230_v8 = vrot.slane %v1209_v63, 4 }
0x16bb   :  { %v1933_v4 = vpack.i.bf16 %v1092_v59, %v1230_v8 }
0x16bd   :  { %1934 = vrot.lane.b32.xlu1 %v1933_v4, %s2109_s22 }
0x16c3   :  { %v2002_v5 = vpop.eup %2001 }
0x16c4   :  { %1212 = vrot.lane.b32.xlu0 %v2002_v5, %s2106_s3 }
0x16c7   :  { %v2527_v45 = vpop.permute.xlu1 %1220 }
0x16c8   :  { %vm1222_vm1 = vcmp.eq.s32.totalorder %v2527_v45, 1 }
0x172f   :  { %v1935_v7 = vpop.permute.xlu1 %1934 }
0x1730   :  { %v1937_v46 = vunpack.i.h.bf16 %v1935_v7  ;;  %v1936_v9 = vunpack.i.l.bf16 %v1935_v7 }
0x1732   :  { %v2532_v10 = vsel %vm1222_vm1, %v1936_v9, %v1937_v46 }
0x1733   :  { %1251 = vrot.lane.b32.xlu1 %v2532_v10, %s2106_s3  ;;  %v1254_v50 = vrot.slane %v2532_v10, 2 }
0x1736   :  { %v1213_v11 = vpop.permute.xlu0 %1212 }
0x1737   :  { %v1215_v13 = vmul.f32 %v2000_v55, %v1213_v11  ;;  %420 = vrot.lane.b32.xlu1 %v2342_v47, %s2107_s21  ;;  %v966_v47 = vsel %vm950_vm8, %v2478_v3, 0.0  ;;  %v1265_v3 = vld [vmem:[%s2693_s4 + $0x18] sm:$0xff]  ;;  %s2115_s4 = smov [#allocation5]  }
0x1738   :  { %v1890_v19 = vpack.c.bf16 %v1265_v3, %v1264_v31 }
0x1739   :  { %v1224_v16 = vrot.slane %v1215_v13, 4 }
0x173a   :  { %1891 = vmatpush3.bf16.msra.mxu0 %v1890_v19 }
0x173b   :  { %552 = vrot.lane.b32.xlu1 %v2541_v17, %s2106_s3  ;;  %1225 = vrot.lane.b32.xlu0 %v1224_v16, %s2107_s21 }
0x173c   :  { %1892 = vmatprep.subr.bf16.mxu0 %v2100_v0 }
0x173e   :  { %1894 = vmatpush3.bf16.msra.mxu0 %v1893_v23 }
0x173f   :  { %823 = vrot.lane.b32.xlu1 %v2549_v18, %s2107_s21  ;;  %1895 = vmatprep.subr.bf16.mxu0 %v2100_v0 }
0x1742   :  { %1897 = vmatpush3.bf16.msra.mxu0 %v1896_v26 }
0x1743   :  { %969 = vrot.lane.b32.xlu1 %v966_v47, %s2107_s21  ;;  %1898 = vmatprep.subr.bf16.mxu0 %v2100_v0 }
0x1746   :  { %1900 = vmatpush3.bf16.msra.mxu0 %v1899_v30 }
0x1747   :  { %1099 = vrot.lane.b32.xlu1 %v1093_v12, %s2106_s3  ;;  %1901 = vmatprep.subr.bf16.mxu0 %v2100_v0 }
0x174a   :  { %1903 = vmatpush3.bf16.msra.mxu0 %v1902_v36 }
0x174b   :  { %1904 = vmatprep.subr.bf16.mxu0 %v2100_v0 }
0x174e   :  { %1906 = vmatpush3.bf16.msra.mxu0 %v1905_v52 }
0x174f   :  { %1907 = vmatprep.subr.bf16.mxu0 %v2100_v0 }
0x1752   :  { %1909 = vmatpush3.bf16.msra.mxu0 %v1908_v41 }
0x17a5   :  { %v1252_v42 = vpop.permute.xlu1 %1251 }
0x17a9   :  { %v421_v15 = vpop.permute.xlu1 %420 }
0x17aa   :  { %424 = vst.msk [vmem:[#allocation5 + $0xa] sm:$0xc] %vm285_vm9, %v421_v15 }
0x17ad   :  { %v553_v44 = vpop.permute.xlu1 %552  ;;  %v1226_v21 = vpop.permute.xlu0 %1225 }
0x17ae   :  { %556 = vst.msk [vmem:[#allocation5 + $0x8] sm:$0xc] %vm285_vm9, %v553_v44  ;;  %v1228_v0 = vsel %vm1222_vm1, %v1226_v21, %v2509_v43  ;;  %v1238_v48 = vsel %vm1222_vm1, %v1226_v21, 0.0 }
0x17af   :  { %967 = vst.msk [vmem:[#allocation5 + $0xa] sm:$0x3] %vm279_vm10, %v966_v47  ;;  %v1246_v28 = vrot.slane %v1228_v0, 2  ;;  %1239 = vst.msk [vmem:[#allocation5 + $0xe] sm:$0x3] %vm279_vm10, %v1238_v48 }
0x17b1   :  { %v824_v49 = vpop.permute.xlu1 %823  ;;  %1247 = vrot.lane.b32.xlu0 %v1246_v28, %s2107_s21 }
0x17b5   :  { %v970_v34 = vpop.permute.xlu1 %969  ;;  %1255 = vrot.lane.b32.xlu0 %v1254_v50, %s2109_s22 }
0x17b9   :  { %v1100_v51 = vpop.permute.xlu1 %1099  ;;  %547 = vrot.lane.b32.xlu0 %v2541_v17, %s2107_s21 }
0x17ba   :  { %1102 = vst.msk [vmem:[#allocation5] sm:$0xc] %vm285_vm9, %v1100_v51 }
0x17bd   :  { %696 = vrot.lane.b32.xlu0 %v2411_v58, %s2107_s21 }
0x17c1   :  { %827 = vrot.lane.b32.xlu0 %v2549_v18, %s2106_s3  ;;  %s1367_s3 = sshll.u32 %s2115_s4, 4  ;;  %s1368_s3 = int_to_ptr.vmem [resolvable:$true] %s1367_s3 }
0x17c2   :  { %s2025_s9 = scalar_lea.vmem %s1368_s3, 256  ;;  %p2030_p9 = scmp.lt.s32.totalorder %s1368_s3, %s1368_s3 }
0x17c3   :  { %p2026_p8 = scmp.ne.s32.totalorder %s1368_s3, %s2025_s9  ;;  %p2031_p10 = scmp.lt.s32.totalorder %s2025_s9, %s2025_s9 }
0x17c5   :  { %1095 = vrot.lane.b32.xlu0 %v1093_v12, %s2107_s21  ;;  %p2032_p11 = por %p2031_p10, %p2030_p9 }
0x17c7   :  { %p2033_p12 = pnand %p2032_p11, %p2026_p8 }
0x17c9   :  { %1241 = vrot.lane.b32.xlu0 %v1238_v48, %s2107_s21 }
0x1823   :  { %v1248_v43 = vpop.permute.xlu0 %1247 }
0x1824   :  { %v1258_v53 = vsel %vm287_vm11, %v1228_v0, %v1248_v43 }
0x1825   :  { %v1259_v54 = vsel %vm167_vm6, %v1258_v53, %v1252_v42 }
0x1827   :  { %v1256_v35 = vpop.permute.xlu0 %1255 }
0x1828   :  { %v1261_v55 = vsel %vm1260_vm14, %v1259_v54, %v1256_v35 }
0x1829   :  { %1756 = vmatmul.mubr.f32.vlgmr.msra.gmra.mrb[8].mxu0 %v1261_v55 }
0x182b   :  { %v548_v56 = vpop.permute.xlu0 %547 }
0x182c   :  { %551 = vst.msk [vmem:[#allocation5 + $0x4] sm:$0x3] %vm279_vm10, %v548_v56 }
0x182d   :  { %972 = vst.msk [vmem:[#allocation5 + $0x2] sm:$0xc] %vm285_vm9, %v970_v34 }
0x182f   :  { %v697_v58 = vpop.permute.xlu0 %696 }
0x1830   :  { %700 = vst.msk [vmem:[#allocation5 + $0x6] sm:$0xc] %vm285_vm9, %v697_v58 }
0x1831   :  { %826 = vst.msk [vmem:[#allocation5 + $0x8] sm:$0x3] %vm279_vm10, %v824_v49 }
0x1833   :  { %v828_v57 = vpop.permute.xlu0 %827 }
0x1834   :  { %830 = vst.msk [vmem:[#allocation5 + $0x4] sm:$0xc] %vm285_vm9, %v828_v57 }
0x1837   :  { %v1096_v6 = vpop.permute.xlu0 %1095 }
0x1838   :  { %1098 = vst.msk [vmem:[#allocation5 + $0xc] sm:$0x3] %vm279_vm10, %v1096_v6 }
0x183b   :  { %v1242_v59 = vpop.permute.xlu0 %1241 }
0x183c   :  { %1244 = vst.msk [vmem:[#allocation5 - $0x2] sm:$0xc] %vm285_vm9, %v1242_v59 }
0x183d   :  { %2036 = shalt.err (!%p2033_p12)
}
0x183e   :  { %s2037_s12 = scalar_lea.hbm %s2695_s6, 256 }
0x183f   :  { %p2038_p13 = scmp.ne.s32.totalorder %s2695_s6, %s2037_s12  ;;  %p2041_p0 = scmp.lt.u32.totalorder %s2037_s12, %s2695_s6 }
0x1841   :  { %p2043_p1 = pnand %p2041_p0, %p2038_p13 }
0x1843   :  { %2046 = shalt.err (!%p2043_p1)
}
0x1844   :  { %s2116_s16 = smov 2   ;;  %v1423_v60 = vld [vmem:[%s2694_s5] ss:$0 sm:$0xff]  ;;  %s2117_s20 = smov [#allocation6]  }
0x1845   :  { %1373 = dma.vmem_to_hbm [thread:$0]  %s1368_s3, 256, %s2695_s6, [#allocation4], %s2107_s21, %s2107_s21, %s2116_s16  }
0x1846   :  { %s1380_s0 = sshll.u32 %s2117_s20, 4  ;;  %s1381_s0 = int_to_ptr.vmem [resolvable:$true] %s1380_s0 }
0x1847   :  { %s2047_s23 = scalar_lea.vmem %s1381_s0, 32  ;;  %p2052_p3 = scmp.lt.s32.totalorder %s1381_s0, %s1381_s0 }
0x1848   :  { %p2048_p2 = scmp.ne.s32.totalorder %s1381_s0, %s2047_s23  ;;  %p2053_p4 = scmp.lt.s32.totalorder %s2047_s23, %s2047_s23 }
0x184a   :  { %p2054_p5 = por %p2053_p4, %p2052_p3 }
0x184c   :  { %p2055_p6 = pnand %p2054_p5, %p2048_p2 }
0x18fc   :  { %v1351_v61 = vpop.f32.mrb[8].mxu0 }
0x18fd   :  { %v1352_v62 = vadd.f32 %v1423_v60, %v1351_v61  ;;  %v1757_v63 = vpop.f32.mrb[9].mxu0 }
0x18ff   :  { %v1355_v8 = vmax.f32 %v1352_v62, 0.0 }
0x1901   :  { %1356 = vst.msk [vmem:[#allocation6] sm:$0x3] %vm279_vm10, %v1355_v8  ;;  %1358 = vrot.lane.b32.xlu1 %v1355_v8, %s2109_s22 }
0x1902   :  { %2058 = shalt.err (!%p2055_p6)
}
0x1903   :  { %s2059_s21 = scalar_lea.hbm %s2696_s7, 32 }
0x1904   :  { %p2060_p7 = scmp.ne.s32.totalorder %s2696_s7, %s2059_s21  ;;  %p2063_p8 = scmp.lt.u32.totalorder %s2059_s21, %s2696_s7 }
0x1906   :  { %p2065_p9 = pnand %p2063_p8, %p2060_p7 }
0x1908   :  { %2068 = shalt.err (!%p2065_p9)
}
0x1909   :  { %1383 = dma.vmem_to_hbm [thread:$0]  %s1381_s0, 32, %s2696_s7, [#allocation7]  }
0x190a   :  { %s2118_s29 = smov [#allocation8]  }
0x190b   :  { %s1390_s30 = sshll.u32 %s2118_s29, 4  ;;  %s1391_s30 = int_to_ptr.vmem [resolvable:$true] %s1390_s30 }
0x190c   :  { %s2069_s4 = scalar_lea.vmem %s1391_s30, 32  ;;  %p2074_p11 = scmp.lt.s32.totalorder %s1391_s30, %s1391_s30 }
0x190d   :  { %p2070_p10 = scmp.ne.s32.totalorder %s1391_s30, %s2069_s4  ;;  %p2075_p12 = scmp.lt.s32.totalorder %s2069_s4, %s2069_s4 }
0x190f   :  { %p2076_p13 = por %p2075_p12, %p2074_p11 }
0x1911   :  { %p2077_p0 = pnand %p2076_p13, %p2070_p10 }
0x1973   :  { %v1359_v4 = vpop.permute.xlu1 %1358 }
0x1974   :  { %1361 = vst.msk [vmem:[#allocation8] sm:$0x3] %vm279_vm10, %v1359_v4 }
0x1975   :  { %2080 = shalt.err (!%p2077_p0)
}
0x1976   :  { %s2081_s10 = scalar_lea.hbm %s2697_s8, 32 }
0x1977   :  { %p2082_p1 = scmp.ne.s32.totalorder %s2697_s8, %s2081_s10  ;;  %p2085_p2 = scmp.lt.u32.totalorder %s2081_s10, %s2697_s8 }
0x1979   :  { %p2087_p3 = pnand %p2085_p2, %p2082_p1 }
0x197b   :  { %2090 = shalt.err (!%p2087_p3)
}
0x197c   :  { %1393 = dma.vmem_to_hbm [thread:$0]  %s1391_s30, 32, %s2697_s8, [#allocation7]  }
0x197d   :  { %2093 = dma.done.wait [#allocation4], 256  }
0x197e   :  { %2094 = vsyncadd [#allocation4], 4294967040 }
0x197f   :  { %2095 = dma.done.wait [#allocation7], 64  }
0x1980   :  { %2096 = vsyncadd [#allocation7], 4294967232 }
0x1981   :  { %1403 = vsyncpa [#allocation3], 1 }
0x1982   :  { %1404 = vsyncpa [#allocation4], 1 }
0x1983   :  { %1405 = vsyncpa [#allocation7], 1 }

</bundles_post_ra>
